<compile_context>
chip_gen: v5e
topology: v5e:2x2
jax: 0.10.0
libtpu: 0.0.40
codegen_flags: <defaults>
</compile_context>

<pallas_src>
import functools

import jax
import jax.numpy as jnp
from jax.experimental import pallas as pl
from jax.experimental.pallas import tpu as pltpu


def _fused_block1_kernel(p_ref, w1_ref, b1_ref, w2_ref, b2_ref, o_ref, h1_ref,
                         *, TH, W, Cmid, Cout):
    """Fused conv1_1 + ReLU + conv1_2 + ReLU for one (batch, row-tile) step.

    p_ref : (1, H+2, W, 27)    bf16  im2row patches of the 3-ch input (row-padded)
    w1_ref: (27, Cmid)         bf16  conv1_1 weights, (kh,kw,ci) flattened
    b1_ref: (1, Cmid)          f32
    w2_ref: (3, 3*Cmid, Cout)  bf16  conv1_2 weights, per-kh (kw,ci) flattened
    b2_ref: (1, Cout)          f32
    o_ref : (1, TH, W, Cout)   f32   output row tile (used as the accumulator)
    h1_ref: (TH+2, W, Cmid)    bf16  VMEM scratch: conv1_1+ReLU rows r0-1..r0+TH
    """
    rt = pl.program_id(1)
    r0 = pl.multiple_of(rt * TH, TH)

    # ---- Stage 1: conv1_1 as a single K=27 MXU matmul + bias + ReLU -> VMEM --
    pw = p_ref[0, pl.ds(r0, TH + 2), :, :]                       # (TH+2, W, 27)
    h = jnp.dot(pw.reshape((TH + 2) * W, 9 * 3), w1_ref[...],
                preferred_element_type=jnp.float32)
    h = h.reshape(TH + 2, W, Cmid) + b1_ref[0]
    h1_ref[...] = jnp.maximum(h, 0.0).astype(jnp.bfloat16)

    # Rows just outside the image are conv1_2's *zero* padding (not conv1_1
    # applied to padded pixels): zero them on the first / last row tile.
    @pl.when(rt == 0)
    def _():
        h1_ref[0, :, :] = jnp.zeros((W, Cmid), jnp.bfloat16)

    @pl.when(rt == pl.num_programs(1) - 1)
    def _():
        h1_ref[TH + 1, :, :] = jnp.zeros((W, Cmid), jnp.bfloat16)

    # ---- Stage 2: conv1_2 as 3 MXU matmuls, K = 3*Cmid (kw folded into K) ----
    zcol = jnp.zeros((TH, 1, Cmid), jnp.bfloat16)
    for kh in range(3):                                          # static unroll
        mid = h1_ref[kh:kh + TH, :, :]                           # leading-dim slice
        left = jnp.concatenate([zcol, mid[:, :W - 1, :]], axis=1)   # column w-1
        right = jnp.concatenate([mid[:, 1:, :], zcol], axis=1)      # column w+1
        taps = jnp.concatenate([left, mid, right], axis=-1)         # (TH, W, 3*Cmid)
        part = jnp.dot(taps.reshape(TH * W, 3 * Cmid), w2_ref[kh],
                       preferred_element_type=jnp.float32).reshape(TH, W, Cout)
        if kh == 0:
            o_ref[0] = part + b2_ref[0]        # init accumulator in VMEM out block
        else:
            o_ref[0] += part
    o_ref[0] = jnp.maximum(o_ref[0], 0.0)


def _pick_row_tile(H, cap=32):
    """Largest divisor of H <= cap (cap=32 keeps v7x's 64 MiB VMEM comfortable;
    on v5e/v6e a cap of 64-128 is preferable at large H)."""
    for t in range(min(H, cap), 0, -1):
        if H % t == 0:
            return t
    return H


def vgg19_block1_fused(x_nchw, params, *, row_tile=None, nhwc_out=False):
    """Conv(3->64,k3,p1)+ReLU+Conv(64->64,k3,p1)+ReLU fused in one pallas_call."""
    w1, b1, w2, b2 = params                       # HWIO f32 weights, f32 biases
    N, Cin, H, W = x_nchw.shape
    assert Cin == 3, x_nchw.shape
    Cmid, Cout = w1.shape[-1], w2.shape[-1]
    TH = row_tile if row_tile is not None else _pick_row_tile(H)
    assert H % TH == 0, (H, TH)
    n_rt = H // TH

    # NCHW -> NHWC and im2row of the *3-channel* input only.  Row p of
    # `patches` holds the 3x3x3 patch for conv1_1 output row s = p-1, so the
    # kernel can read a uniform (TH+2)-row window per tile without clipping.
    x = jnp.transpose(x_nchw, (0, 2, 3, 1))
    xp = jnp.pad(x, ((0, 0), (2, 2), (1, 1), (0, 0)))           # 2-row / 1-col halo
    patches = jnp.concatenate(
        [xp[:, dh:dh + H + 2, dw:dw + W, :] for dh in range(3) for dw in range(3)],
        axis=-1).astype(jnp.bfloat16)                            # (N, H+2, W, 27)

    w1p = w1.reshape(9 * Cin, Cmid).astype(jnp.bfloat16)         # (27, 64)
    w2p = w2.reshape(3, 3 * Cmid, Cout).astype(jnp.bfloat16)     # (3, 192, 64)
    b1r = b1.reshape(1, Cmid).astype(jnp.float32)
    b2r = b2.reshape(1, Cout).astype(jnp.float32)

    kernel = functools.partial(_fused_block1_kernel,
                               TH=TH, W=W, Cmid=Cmid, Cout=Cout)

    flops = 2 * N * H * W * Cmid * (9 * Cin + 9 * Cout)
    bytes_accessed = (patches.size * 2 + w1p.size * 2 + w2p.size * 2
                      + (b1r.size + b2r.size) * 4 + N * H * W * Cout * 4)

    out = pl.pallas_call(
        kernel,
        out_shape=jax.ShapeDtypeStruct((N, H, W, Cout), jnp.float32),
        grid=(N, n_rt),
        in_specs=[
            # Whole per-batch patch slab: block index constant along the
            # row-tile axis, so it is DMA'd once per batch and stays resident.
            pl.BlockSpec((1, H + 2, W, 9 * Cin), lambda n, rt: (n, 0, 0, 0)),
            pl.BlockSpec((9 * Cin, Cmid), lambda n, rt: (0, 0)),
            pl.BlockSpec((1, Cmid), lambda n, rt: (0, 0)),
            pl.BlockSpec((3, 3 * Cmid, Cout), lambda n, rt: (0, 0, 0)),
            pl.BlockSpec((1, Cout), lambda n, rt: (0, 0)),
        ],
        out_specs=pl.BlockSpec((1, TH, W, Cout), lambda n, rt: (n, rt, 0, 0)),
        scratch_shapes=[pltpu.VMEM((TH + 2, W, Cmid), jnp.bfloat16)],
        compiler_params=pltpu.CompilerParams(
            dimension_semantics=("parallel", "parallel"),
            vmem_limit_bytes=32 * 1024 * 1024),
        cost_estimate=pl.CostEstimate(flops=flops, transcendentals=0,
                                      bytes_accessed=bytes_accessed),
    )(patches, w1p, b1r, w2p, b2r)

    if nhwc_out:
        return out
    # Match the PyTorch module's NCHW return.  Consumers that accept NHWC can
    # pass nhwc_out=True and skip this extra HBM round trip.
    return jnp.transpose(out, (0, 3, 1, 2))


def init_params(key):
    """Synthetic weights with VGG19 features[0..3] shapes (HWIO layout)."""
    k1, k2, k3, k4 = jax.random.split(key, 4)
    w1 = jax.random.normal(k1, (3, 3, 3, 64), jnp.float32) * 0.05   # conv1_1
    b1 = jax.random.normal(k2, (64,), jnp.float32) * 0.05
    w2 = jax.random.normal(k3, (3, 3, 64, 64), jnp.float32) * 0.05  # conv1_2
    b2 = jax.random.normal(k4, (64,), jnp.float32) * 0.05
    return (w1, b1, w2, b2)


@functools.partial(jax.jit, static_argnames=("row_tile", "nhwc_out"))
def vgg19_forward(x_nchw, params, *, row_tile=None, nhwc_out=False):
    """Mirrors VGG19.forward: returns [activation after features idx == 3]."""
    feat = vgg19_block1_fused(x_nchw, params, row_tile=row_tile,
                              nhwc_out=nhwc_out)
    return [feat]


def _ref_forward(x_nchw, params):
    """Pure-JAX (XLA) reference of features[0..3] for a correctness check."""
    w1, b1, w2, b2 = params
    dn = ("NCHW", "HWIO", "NCHW")
    y = jax.lax.conv_general_dilated(x_nchw, w1, (1, 1), "SAME",
                                     dimension_numbers=dn)
    y = jnp.maximum(y + b1.reshape(1, -1, 1, 1), 0.0)
    y = jax.lax.conv_general_dilated(y, w2, (1, 1), "SAME",
                                     dimension_numbers=dn)
    y = jnp.maximum(y + b2.reshape(1, -1, 1, 1), 0.0)
    return y


if __name__ == "__main__":
    key = jax.random.PRNGKey(0)
    kx, kp = jax.random.split(key)
    # Small input consistent with the module: 3-channel NCHW image batch.
    x = jax.random.normal(kx, (2, 3, 16, 16), jnp.float32)
    params = init_params(kp)

    # row_tile=8 -> grid (2 batches x 2 row tiles), so the halo recompute and
    # border-row masking paths are exercised even at this small test size.
    feature_maps = vgg19_forward(x, params, row_tile=8)
    out = jax.block_until_ready(feature_maps[0])
    assert out.shape == (2, 64, 16, 16), out.shape
    assert out.dtype == jnp.float32

    # Numerical check vs. an independent XLA reference (bf16 MXU operands ->
    # loose tolerance).
    ref = _ref_forward(x, params)
    max_err = float(jnp.max(jnp.abs(out - ref)))
    assert jnp.allclose(out, ref, atol=5e-2, rtol=5e-2), f"max abs err {max_err}"

    print("KERNEL_OK")
</pallas_src>

<mosaic_0001>
module attributes {stable_mosaic.version = 11 : i64} {
  func.func @_fused_block1_kernel(%arg0: i32, %arg1: i32, %arg2: memref<1x18x16x27xbf16, #tpu.memory_space<vmem>>, %arg3: memref<27x64xbf16, #tpu.memory_space<vmem>>, %arg4: memref<1x64xf32, #tpu.memory_space<vmem>>, %arg5: memref<3x192x64xbf16, #tpu.memory_space<vmem>>, %arg6: memref<1x64xf32, #tpu.memory_space<vmem>>, %arg7: memref<1x8x16x64xf32, #tpu.memory_space<vmem>>, %arg8: memref<10x16x64xbf16, #tpu.memory_space<vmem>>) attributes {dimension_semantics = [#tpu.dimension_semantics<parallel>, #tpu.dimension_semantics<parallel>], iteration_bounds = array<i64: 2, 2>, scalar_prefetch = 0 : i64, scratch_operands = 1 : i64, tpu.core_type = #tpu.core_type<tc>, window_params = [{transform_indices = @transform_0, window_bounds = array<i64: 1, 18, 16, 27>}, {pipeline_mode = #tpu.pipeline_mode<synchronous>, transform_indices = @transform_1, window_bounds = array<i64: 27, 64>}, {pipeline_mode = #tpu.pipeline_mode<synchronous>, transform_indices = @transform_2, window_bounds = array<i64: 1, 64>}, {pipeline_mode = #tpu.pipeline_mode<synchronous>, transform_indices = @transform_3, window_bounds = array<i64: 3, 192, 64>}, {pipeline_mode = #tpu.pipeline_mode<synchronous>, transform_indices = @transform_4, window_bounds = array<i64: 1, 64>}, {transform_indices = @transform_5, window_bounds = array<i64: 1, 8, 16, 64>}]} {
    %c8_i32 = arith.constant 8 : i32
    %0 = arith.muli %arg1, %c8_i32 : i32
    %1 = tpu.assume_multiple %0, 8 : i32
    %c0 = arith.constant 0 : index
    %2 = arith.index_cast %1 : i32 to index
    %c0_0 = arith.constant 0 : index
    %c0_1 = arith.constant 0 : index
    %3 = vector.load %arg2[%c0, %2, %c0_0, %c0_1] : memref<1x18x16x27xbf16, #tpu.memory_space<vmem>>, vector<1x10x16x27xbf16>
    %4 = vector.shape_cast %3 : vector<1x10x16x27xbf16> to vector<10x16x27xbf16>
    %5 = vector.shape_cast %4 : vector<10x16x27xbf16> to vector<160x27xbf16>
    %c0_2 = arith.constant 0 : index
    %c0_3 = arith.constant 0 : index
    %6 = vector.load %arg3[%c0_2, %c0_3] : memref<27x64xbf16, #tpu.memory_space<vmem>>, vector<27x64xbf16>
    %cst = arith.constant dense<0.000000e+00> : vector<160x64xf32>
    %7 = tpu.matmul %5, %6, %cst {dimension_numbers = #tpu.dot_dimension_numbers<[1], [0], [0], [1], [0, 0, 1, 1], [], []>} : vector<160x27xbf16>, vector<27x64xbf16>, vector<160x64xf32> -> vector<160x64xf32>
    %8 = vector.shape_cast %7 : vector<160x64xf32> to vector<10x16x64xf32>
    %c0_4 = arith.constant 0 : index
    %c0_5 = arith.constant 0 : index
    %9 = vector.load %arg4[%c0_4, %c0_5] : memref<1x64xf32, #tpu.memory_space<vmem>>, vector<1x64xf32>
    %10 = vector.shape_cast %9 : vector<1x64xf32> to vector<64xf32>
    %11 = vector.shape_cast %10 : vector<64xf32> to vector<1x1x64xf32>
    %12 = vector.broadcast %11 : vector<1x1x64xf32> to vector<10x16x64xf32>
    %13 = arith.addf %8, %12 : vector<10x16x64xf32>
    %cst_6 = arith.constant 0.000000e+00 : f32
    %14 = vector.broadcast %cst_6 : f32 to vector<10x16x64xf32>
    %15 = arith.maximumf %13, %14 : vector<10x16x64xf32>
    %16 = arith.truncf %15 : vector<10x16x64xf32> to vector<10x16x64xbf16>
    %c0_7 = arith.constant 0 : index
    %c0_8 = arith.constant 0 : index
    %c0_9 = arith.constant 0 : index
    %17 = vector.load %arg8[%c0_7, %c0_8, %c0_9] : memref<10x16x64xbf16, #tpu.memory_space<vmem>>, vector<10x16x64xbf16>
    tpu.vector_store %arg8[%c0_7, %c0_8, %c0_9], %16 {strides = array<i32>} : memref<10x16x64xbf16, #tpu.memory_space<vmem>>, vector<10x16x64xbf16>,
    %c0_i32 = arith.constant 0 : i32
    %18 = arith.cmpi eq, %arg1, %c0_i32 : i32
    %19 = arith.extui %18 : i1 to i32
    %c0_i32_10 = arith.constant 0 : i32
    %20 = arith.cmpi ne, %19, %c0_i32_10 : i32
    scf.if %20 {
      %cst_63 = arith.constant 0.000000e+00 : bf16
      %85 = vector.broadcast %cst_63 : bf16 to vector<16x64xbf16>
      %c0_64 = arith.constant 0 : index
      %c0_65 = arith.constant 0 : index
      %c0_66 = arith.constant 0 : index
      %86 = vector.load %arg8[%c0_64, %c0_65, %c0_66] : memref<10x16x64xbf16, #tpu.memory_space<vmem>>, vector<1x16x64xbf16>
      %87 = vector.shape_cast %86 : vector<1x16x64xbf16> to vector<16x64xbf16>
      %88 = vector.shape_cast %85 : vector<16x64xbf16> to vector<1x16x64xbf16>
      tpu.vector_store %arg8[%c0_64, %c0_65, %c0_66], %88 {strides = array<i32>} : memref<10x16x64xbf16, #tpu.memory_space<vmem>>, vector<1x16x64xbf16>,
    } else {
    }
    %c1_i32 = arith.constant 1 : i32
    %21 = arith.cmpi eq, %arg1, %c1_i32 : i32
    %22 = arith.extui %21 : i1 to i32
    %c0_i32_11 = arith.constant 0 : i32
    %23 = arith.cmpi ne, %22, %c0_i32_11 : i32
    scf.if %23 {
      %cst_63 = arith.constant 0.000000e+00 : bf16
      %85 = vector.broadcast %cst_63 : bf16 to vector<16x64xbf16>
      %c9 = arith.constant 9 : index
      %c0_64 = arith.constant 0 : index
      %c0_65 = arith.constant 0 : index
      %86 = vector.load %arg8[%c9, %c0_64, %c0_65] : memref<10x16x64xbf16, #tpu.memory_space<vmem>>, vector<1x16x64xbf16>
      %87 = vector.shape_cast %86 : vector<1x16x64xbf16> to vector<16x64xbf16>
      %88 = vector.shape_cast %85 : vector<16x64xbf16> to vector<1x16x64xbf16>
      tpu.vector_store %arg8[%c9, %c0_64, %c0_65], %88 {strides = array<i32>} : memref<10x16x64xbf16, #tpu.memory_space<vmem>>, vector<1x16x64xbf16>,
    } else {
    }
    %cst_12 = arith.constant 0.000000e+00 : bf16
    %24 = vector.broadcast %cst_12 : bf16 to vector<8x1x64xbf16>
    %c0_13 = arith.constant 0 : index
    %c0_14 = arith.constant 0 : index
    %c0_15 = arith.constant 0 : index
    %25 = vector.load %arg8[%c0_13, %c0_14, %c0_15] : memref<10x16x64xbf16, #tpu.memory_space<vmem>>, vector<8x16x64xbf16>
    %26 = vector.extract_strided_slice %25 {offsets = [0, 0, 0], sizes = [8, 15, 64], strides = [1, 1, 1]} : vector<8x16x64xbf16> to vector<8x15x64xbf16>
    %27 = tpu.concatenate %24, %26 in 1 : vector<8x1x64xbf16>, vector<8x15x64xbf16> -> vector<8x16x64xbf16>
    %28 = vector.extract_strided_slice %25 {offsets = [0, 1, 0], sizes = [8, 15, 64], strides = [1, 1, 1]} : vector<8x16x64xbf16> to vector<8x15x64xbf16>
    %29 = tpu.concatenate %28, %24 in 1 : vector<8x15x64xbf16>, vector<8x1x64xbf16> -> vector<8x16x64xbf16>
    %30 = tpu.concatenate %27, %25, %29 in 2 : vector<8x16x64xbf16>, vector<8x16x64xbf16>, vector<8x16x64xbf16> -> vector<8x16x192xbf16>
    %31 = vector.shape_cast %30 : vector<8x16x192xbf16> to vector<128x192xbf16>
    %c0_16 = arith.constant 0 : index
    %c0_17 = arith.constant 0 : index
    %c0_18 = arith.constant 0 : index
    %32 = vector.load %arg5[%c0_16, %c0_17, %c0_18] : memref<3x192x64xbf16, #tpu.memory_space<vmem>>, vector<1x192x64xbf16>
    %33 = vector.shape_cast %32 : vector<1x192x64xbf16> to vector<192x64xbf16>
    %cst_19 = arith.constant dense<0.000000e+00> : vector<128x64xf32>
    %34 = tpu.matmul %31, %33, %cst_19 {dimension_numbers = #tpu.dot_dimension_numbers<[1], [0], [0], [1], [0, 0, 1, 1], [], []>} : vector<128x192xbf16>, vector<192x64xbf16>, vector<128x64xf32> -> vector<128x64xf32>
    %35 = vector.shape_cast %34 : vector<128x64xf32> to vector<8x16x64xf32>
    %c0_20 = arith.constant 0 : index
    %c0_21 = arith.constant 0 : index
    %36 = vector.load %arg6[%c0_20, %c0_21] : memref<1x64xf32, #tpu.memory_space<vmem>>, vector<1x64xf32>
    %37 = vector.shape_cast %36 : vector<1x64xf32> to vector<64xf32>
    %38 = vector.shape_cast %37 : vector<64xf32> to vector<1x1x64xf32>
    %39 = vector.broadcast %38 : vector<1x1x64xf32> to vector<8x16x64xf32>
    %40 = arith.addf %35, %39 : vector<8x16x64xf32>
    %c0_22 = arith.constant 0 : index
    %c0_23 = arith.constant 0 : index
    %c0_24 = arith.constant 0 : index
    %c0_25 = arith.constant 0 : index
    %41 = vector.load %arg7[%c0_22, %c0_23, %c0_24, %c0_25] : memref<1x8x16x64xf32, #tpu.memory_space<vmem>>, vector<1x8x16x64xf32>
    %42 = vector.shape_cast %41 : vector<1x8x16x64xf32> to vector<8x16x64xf32>
    %43 = vector.shape_cast %40 : vector<8x16x64xf32> to vector<1x8x16x64xf32>
    tpu.vector_store %arg7[%c0_22, %c0_23, %c0_24, %c0_25], %43 {strides = array<i32>} : memref<1x8x16x64xf32, #tpu.memory_space<vmem>>, vector<1x8x16x64xf32>,
    %c1 = arith.constant 1 : index
    %c0_26 = arith.constant 0 : index
    %c0_27 = arith.constant 0 : index
    %44 = vector.load %arg8[%c1, %c0_26, %c0_27] : memref<10x16x64xbf16, #tpu.memory_space<vmem>>, vector<8x16x64xbf16>
    %45 = vector.extract_strided_slice %44 {offsets = [0, 0, 0], sizes = [8, 15, 64], strides = [1, 1, 1]} : vector<8x16x64xbf16> to vector<8x15x64xbf16>
    %46 = tpu.concatenate %24, %45 in 1 : vector<8x1x64xbf16>, vector<8x15x64xbf16> -> vector<8x16x64xbf16>
    %47 = vector.extract_strided_slice %44 {offsets = [0, 1, 0], sizes = [8, 15, 64], strides = [1, 1, 1]} : vector<8x16x64xbf16> to vector<8x15x64xbf16>
    %48 = tpu.concatenate %47, %24 in 1 : vector<8x15x64xbf16>, vector<8x1x64xbf16> -> vector<8x16x64xbf16>
    %49 = tpu.concatenate %46, %44, %48 in 2 : vector<8x16x64xbf16>, vector<8x16x64xbf16>, vector<8x16x64xbf16> -> vector<8x16x192xbf16>
    %50 = vector.shape_cast %49 : vector<8x16x192xbf16> to vector<128x192xbf16>
    %c1_28 = arith.constant 1 : index
    %c0_29 = arith.constant 0 : index
    %c0_30 = arith.constant 0 : index
    %51 = vector.load %arg5[%c1_28, %c0_29, %c0_30] : memref<3x192x64xbf16, #tpu.memory_space<vmem>>, vector<1x192x64xbf16>
    %52 = vector.shape_cast %51 : vector<1x192x64xbf16> to vector<192x64xbf16>
    %cst_31 = arith.constant dense<0.000000e+00> : vector<128x64xf32>
    %53 = tpu.matmul %50, %52, %cst_31 {dimension_numbers = #tpu.dot_dimension_numbers<[1], [0], [0], [1], [0, 0, 1, 1], [], []>} : vector<128x192xbf16>, vector<192x64xbf16>, vector<128x64xf32> -> vector<128x64xf32>
    %54 = vector.shape_cast %53 : vector<128x64xf32> to vector<8x16x64xf32>
    %c0_32 = arith.constant 0 : index
    %c0_33 = arith.constant 0 : index
    %c0_34 = arith.constant 0 : index
    %c0_35 = arith.constant 0 : index
    %55 = vector.load %arg7[%c0_32, %c0_33, %c0_34, %c0_35] : memref<1x8x16x64xf32, #tpu.memory_space<vmem>>, vector<1x8x16x64xf32>
    %56 = vector.shape_cast %55 : vector<1x8x16x64xf32> to vector<8x16x64xf32>
    %57 = arith.addf %56, %54 : vector<8x16x64xf32>
    %c0_36 = arith.constant 0 : index
    %c0_37 = arith.constant 0 : index
    %c0_38 = arith.constant 0 : index
    %c0_39 = arith.constant 0 : index
    %58 = vector.load %arg7[%c0_36, %c0_37, %c0_38, %c0_39] : memref<1x8x16x64xf32, #tpu.memory_space<vmem>>, vector<1x8x16x64xf32>
    %59 = vector.shape_cast %58 : vector<1x8x16x64xf32> to vector<8x16x64xf32>
    %60 = vector.shape_cast %57 : vector<8x16x64xf32> to vector<1x8x16x64xf32>
    tpu.vector_store %arg7[%c0_36, %c0_37, %c0_38, %c0_39], %60 {strides = array<i32>} : memref<1x8x16x64xf32, #tpu.memory_space<vmem>>, vector<1x8x16x64xf32>,
    %c2 = arith.constant 2 : index
    %c0_40 = arith.constant 0 : index
    %c0_41 = arith.constant 0 : index
    %61 = vector.load %arg8[%c2, %c0_40, %c0_41] : memref<10x16x64xbf16, #tpu.memory_space<vmem>>, vector<8x16x64xbf16>
    %62 = vector.extract_strided_slice %61 {offsets = [0, 0, 0], sizes = [8, 15, 64], strides = [1, 1, 1]} : vector<8x16x64xbf16> to vector<8x15x64xbf16>
    %63 = tpu.concatenate %24, %62 in 1 : vector<8x1x64xbf16>, vector<8x15x64xbf16> -> vector<8x16x64xbf16>
    %64 = vector.extract_strided_slice %61 {offsets = [0, 1, 0], sizes = [8, 15, 64], strides = [1, 1, 1]} : vector<8x16x64xbf16> to vector<8x15x64xbf16>
    %65 = tpu.concatenate %64, %24 in 1 : vector<8x15x64xbf16>, vector<8x1x64xbf16> -> vector<8x16x64xbf16>
    %66 = tpu.concatenate %63, %61, %65 in 2 : vector<8x16x64xbf16>, vector<8x16x64xbf16>, vector<8x16x64xbf16> -> vector<8x16x192xbf16>
    %67 = vector.shape_cast %66 : vector<8x16x192xbf16> to vector<128x192xbf16>
    %c2_42 = arith.constant 2 : index
    %c0_43 = arith.constant 0 : index
    %c0_44 = arith.constant 0 : index
    %68 = vector.load %arg5[%c2_42, %c0_43, %c0_44] : memref<3x192x64xbf16, #tpu.memory_space<vmem>>, vector<1x192x64xbf16>
    %69 = vector.shape_cast %68 : vector<1x192x64xbf16> to vector<192x64xbf16>
    %cst_45 = arith.constant dense<0.000000e+00> : vector<128x64xf32>
    %70 = tpu.matmul %67, %69, %cst_45 {dimension_numbers = #tpu.dot_dimension_numbers<[1], [0], [0], [1], [0, 0, 1, 1], [], []>} : vector<128x192xbf16>, vector<192x64xbf16>, vector<128x64xf32> -> vector<128x64xf32>
    %71 = vector.shape_cast %70 : vector<128x64xf32> to vector<8x16x64xf32>
    %c0_46 = arith.constant 0 : index
    %c0_47 = arith.constant 0 : index
    %c0_48 = arith.constant 0 : index
    %c0_49 = arith.constant 0 : index
    %72 = vector.load %arg7[%c0_46, %c0_47, %c0_48, %c0_49] : memref<1x8x16x64xf32, #tpu.memory_space<vmem>>, vector<1x8x16x64xf32>
    %73 = vector.shape_cast %72 : vector<1x8x16x64xf32> to vector<8x16x64xf32>
    %74 = arith.addf %73, %71 : vector<8x16x64xf32>
    %c0_50 = arith.constant 0 : index
    %c0_51 = arith.constant 0 : index
    %c0_52 = arith.constant 0 : index
    %c0_53 = arith.constant 0 : index
    %75 = vector.load %arg7[%c0_50, %c0_51, %c0_52, %c0_53] : memref<1x8x16x64xf32, #tpu.memory_space<vmem>>, vector<1x8x16x64xf32>
    %76 = vector.shape_cast %75 : vector<1x8x16x64xf32> to vector<8x16x64xf32>
    %77 = vector.shape_cast %74 : vector<8x16x64xf32> to vector<1x8x16x64xf32>
    tpu.vector_store %arg7[%c0_50, %c0_51, %c0_52, %c0_53], %77 {strides = array<i32>} : memref<1x8x16x64xf32, #tpu.memory_space<vmem>>, vector<1x8x16x64xf32>,
    %c0_54 = arith.constant 0 : index
    %c0_55 = arith.constant 0 : index
    %c0_56 = arith.constant 0 : index
    %c0_57 = arith.constant 0 : index
    %78 = vector.load %arg7[%c0_54, %c0_55, %c0_56, %c0_57] : memref<1x8x16x64xf32, #tpu.memory_space<vmem>>, vector<1x8x16x64xf32>
    %79 = vector.shape_cast %78 : vector<1x8x16x64xf32> to vector<8x16x64xf32>
    %cst_58 = arith.constant 0.000000e+00 : f32
    %80 = vector.broadcast %cst_58 : f32 to vector<8x16x64xf32>
    %81 = arith.maximumf %79, %80 : vector<8x16x64xf32>
    %c0_59 = arith.constant 0 : index
    %c0_60 = arith.constant 0 : index
    %c0_61 = arith.constant 0 : index
    %c0_62 = arith.constant 0 : index
    %82 = vector.load %arg7[%c0_59, %c0_60, %c0_61, %c0_62] : memref<1x8x16x64xf32, #tpu.memory_space<vmem>>, vector<1x8x16x64xf32>
    %83 = vector.shape_cast %82 : vector<1x8x16x64xf32> to vector<8x16x64xf32>
    %84 = vector.shape_cast %81 : vector<8x16x64xf32> to vector<1x8x16x64xf32>
    tpu.vector_store %arg7[%c0_59, %c0_60, %c0_61, %c0_62], %84 {strides = array<i32>} : memref<1x8x16x64xf32, #tpu.memory_space<vmem>>, vector<1x8x16x64xf32>,
    return
  }
  func.func @transform_0(%arg0: i32, %arg1: i32) -> (i32, i32, i32, i32) {
    %c0_i32 = arith.constant 0 : i32
    %c0_i32_0 = arith.constant 0 : i32
    %c0_i32_1 = arith.constant 0 : i32
    %c0_i32_2 = arith.constant 0 : i32
    return %arg0, %c0_i32, %c0_i32_0, %c0_i32_1 : i32, i32, i32, i32
  }
  func.func @transform_1(%arg0: i32, %arg1: i32) -> (i32, i32) {
    %c0_i32 = arith.constant 0 : i32
    %c0_i32_0 = arith.constant 0 : i32
    %c0_i32_1 = arith.constant 0 : i32
    return %c0_i32, %c0_i32_0 : i32, i32
  }
  func.func @transform_2(%arg0: i32, %arg1: i32) -> (i32, i32) {
    %c0_i32 = arith.constant 0 : i32
    %c0_i32_0 = arith.constant 0 : i32
    %c0_i32_1 = arith.constant 0 : i32
    return %c0_i32, %c0_i32_0 : i32, i32
  }
  func.func @transform_3(%arg0: i32, %arg1: i32) -> (i32, i32, i32) {
    %c0_i32 = arith.constant 0 : i32
    %c0_i32_0 = arith.constant 0 : i32
    %c0_i32_1 = arith.constant 0 : i32
    %c0_i32_2 = arith.constant 0 : i32
    return %c0_i32, %c0_i32_0, %c0_i32_1 : i32, i32, i32
  }
  func.func @transform_4(%arg0: i32, %arg1: i32) -> (i32, i32) {
    %c0_i32 = arith.constant 0 : i32
    %c0_i32_0 = arith.constant 0 : i32
    %c0_i32_1 = arith.constant 0 : i32
    return %c0_i32, %c0_i32_0 : i32, i32
  }
  func.func @transform_5(%arg0: i32, %arg1: i32) -> (i32, i32, i32, i32) {
    %c0_i32 = arith.constant 0 : i32
    %c0_i32_0 = arith.constant 0 : i32
    %c0_i32_1 = arith.constant 0 : i32
    return %arg0, %arg1, %c0_i32, %c0_i32_0 : i32, i32, i32, i32
  }
}

</mosaic_0001>

<bundles_post_ra>
// kernel: vgg19_forward.1
= control target key start
LH: loop header
LB: loop body
LE: loop exit
PB: predicated region body
PF: predicated region fallthrough
CT: control target
= control target key end

     0   :  { %10 = vsyncpa [#allocation4], 0  ;;  %s3875_s0 = inlined_call_operand.vmem [shape: bf16[2,18,16,27], index: 0, kind: input, shape index: {}]   ;;  %s3876_s1 = inlined_call_operand.vmem [shape: bf16[27,64], index: 1, kind: input, shape index: {}]   ;;  %s3877_s2 = inlined_call_operand.vmem [shape: f32[1,64], index: 2, kind: input, shape index: {}]   ;;  %s3878_s3 = inlined_call_operand.vmem [shape: bf16[3,192,64], index: 3, kind: input, shape index: {}]   ;;  %s3879_s4 = inlined_call_operand.vmem [shape: f32[1,64], index: 4, kind: input, shape index: {}]   ;;  %s3880_s5 = inlined_call_operand.hbm [shape: f32[2,16,16,64], index: 5, kind: output, shape index: {}]  }
   0x1   :  { %12 = vsyncpa [#allocation4 + $0x1], 0  ;;  %s2785_s18 = smov 0   ;;  %s2787_s19 = smov 0  }
   0x2   :  { %s2789_s20 = smov 0   ;;  %s2791_s21 = smov 0  }
   0x3   :  { %s2793_s22 = smov 0   ;;  %s2795_s23 = smov 0  }
   0x4   :  { %s2797_s24 = smov 0   ;;  %s2799_s25 = smov 0  }
   0x5 LB: > { %s2089_s26 = sadd.s32 4294967295, %s2747_s25   ;;  %s2090_s27 = sadd.s32 4294967294, %s2747_s25   ;;  %s2747_s25 = sphi %s2799_s25, %s18_s25   ;;  %s2743_s24 = sphi %s2797_s24, %s3893_s24   ;;  %s2739_s23 = sphi %s2795_s23, %s3892_s23   ;;  %s2735_s22 = sphi %s2793_s22, %s3891_s22   ;;  %s2731_s21 = sphi %s2791_s21, %s3890_s21   ;;  %s2727_s20 = sphi %s2789_s20, %s3889_s20   ;;  %s2723_s19 = sphi %s2787_s19, %s3888_s19   ;;  %s2719_s18 = sphi %s2785_s18, %s3887_s18  }
   0x6   : > { %s27_s28 = sadd.s32 1, %s2739_s23  ;;  %s30_s29 = sadd.s32 1, %s2743_s24 }
   0x7   : > { %p28_p0 = scmp.ge.s32.totalorder %s27_s28, 2  ;;  %p159_p1 = scmp.ne.s32.totalorder %s2727_s20, %s2723_s19 }
   0x8   : > { %p160_p2 = scmp.eq.s32.totalorder %s2089_s26, 3  ;;  %p165_p5 = scmp.ne.s32.totalorder %s2723_s19, %s2719_s18 }
   0x9   : > { %s3895_s28 = smov (%p28_p0, %s27_s28), 0  ;;  %s3897_s29 = smov (!%p28_p0, %s30_s29), %s2743_s24 }
   0xa   : > { %s145_s30 = ssub.s32 %s2739_s23, %s3895_s28  ;;  %p2836_p3 = por %p160_p2, %p159_p1 }
   0xb   : > { %p32_p4 = scmp.ge.s32.totalorder %s3897_s29, 2  ;;  %p166_p6 = scmp.eq.s32.totalorder %s2090_s27, 3 }
   0xc   : > { %p2093_p7 = scmp.ge.s32.totalorder %s2747_s25, 1  ;;  %p204_p9 = scmp.lt.s32.totalorder %s2747_s25, 5 }
   0xd   : > { %s3899_s29 = smov (%p32_p4, %s3897_s29), 0  ;;  %p2845_p8 = por %p166_p6, %p165_p5 }
   0xe   : > { %s144_s8 = ssub.s32 %s2743_s24, %s3899_s29  ;;  %s149_s9 = sadd.s32 1, %s2727_s20 }
   0xf   : > { %s146_s10 = sor.u32 %s145_s30, %s144_s8  ;;  %p205_p10 = pnand %p2093_p7, %p204_p9 }
  0x10   : > { %p147_p11 = scmp.eq.s32.totalorder %s146_s10, 0  ;;  %s229_s12 = sand.u32 (!%p205_p10), 1, %s2723_s19  }
  0x11   : > { %208 = sbr.rel (%p205_p10) target bundleno = 819 (0x333), region = 40  ;;  %s2865_s17 = sshll.u32 (!%p205_p10), %s229_s12, 7 }
  0x12   : > { %s2854_s11 = scalar_select %p147_p11, %s2727_s20, %s149_s9  }
  0x13   : > { %p232_p12 = scmp.lt.s32.totalorder (!%p205_p10), %s2735_s22, 1  ;;  %s2479_s30 = sshll.u32 (!%p205_p10), %s2731_s21, 6 }
  0x14   : > { %p2157_p13 = scmp.ne.s32.totalorder (!%p205_p10), %s2731_s21, 0 }
  0x16   : > { %v2145_v0 = vld [vmem:[%s3876_s1 + $0x8] sm:$0xf]  ;;  %v2491_v1 = vld [vmem:[%s3876_s1 + $0x8] sm:$0x30]  ;;  %vm359_vm0 = vcmask 1044480   ;;  %vm360_vm1 = vcmask 1045504  }
  0x17   : > { %v2146_v2 = vor.u32 %v2491_v1, %v2145_v0  ;;  %v2749_v3 = vmov 65535   ;;  %s233_s26 = scalar_select %p232_p12, %s2735_s22, 1  ;;  %v2490_v7 = vld [vmem:[%s3876_s1] sm:$0xff]  ;;  %vm328_vm2 = vcmask 220160   ;;  %vm489_vm3 = vcmask 519168  }
  0x18   : > { %v361_v4 = vsel %vm359_vm0, 4294967295, %v2749_v3  ;;  %v2897_v16 = vld [vmem:[%s3877_s2] ss:$0 sm:$0xff] }
  0x19   : > { %v362_v5 = vsel %vm360_vm1, %v361_v4, 0  ;;  %s2573_s27 = smul.u32 144, %s233_s26 }
  0x1a   : > { %v364_v6 = vand.u32 %v2146_v2, %v362_v5 }
  0x1b   : > { %s236_s14 = scalar_lea.vmem %s3875_s0, %s2573_s27  ;;  %s2944_s27 = scalar_lea.vmem [#allocation3], %s2865_s17 }
  0x1c   : > { %372 = vmatpush.bf16.msra.mxu0 %v364_v6  ;;  %s2876_s15 = scalar_lea.vmem %s236_s14, %s2479_s30 }
  0x1d   : > { %v2480_v8 = vld [vmem:[%s2876_s15] sm:$0xff]  ;;  %v2481_v9 = vld [vmem:[%s2876_s15 + $0x8] sm:$0xff]  ;;  %v2482_v10 = vld [vmem:[%s2876_s15 + $0x10] sm:$0xff] }
  0x1e   : > { %v2483_v11 = vld [vmem:[%s2876_s15 + $0x18] sm:$0xff]  ;;  %v2484_v12 = vld [vmem:[%s2876_s15 + $0x20] sm:$0xff]  ;;  %v2485_v13 = vld [vmem:[%s2876_s15 + $0x28] sm:$0xff] }
  0x1f   : > { %v2486_v14 = vld [vmem:[%s2876_s15 + $0x30] sm:$0xff]  ;;  %v2487_v15 = vld [vmem:[%s2876_s15 + $0x38] sm:$0xff]  ;;  %v2488_v17 = vld [vmem:[%s2876_s15 + $0x40] sm:$0xff] }
  0x20   : > { %373 = vmatpush.bf16.msra.mxu0 %v2490_v7  ;;  %v2489_v26 = vld [vmem:[%s2876_s15 + $0x48] sm:$0xff] }
  0x23   : > { %2147 = vmatmul.msk.bf16.vlgmr.msra.gmra.mxu0 %vm328_vm2, %v2480_v8 }
  0x33   : > { %2148 = vmatmul.msk.bf16.gmra.mxu0 %vm328_vm2, %v2481_v9 }
  0x43   : > { %2149 = vmatmul.msk.bf16.gmra.mxu0 %vm328_vm2, %v2482_v10 }
  0x53   : > { %2150 = vmatmul.msk.bf16.gmra.mxu0 %vm328_vm2, %v2483_v11 }
  0x63   : > { %2151 = vmatmul.msk.bf16.gmra.mxu0 %vm328_vm2, %v2484_v12 }
  0x73   : > { %2152 = vmatmul.msk.bf16.gmra.mxu0 %vm328_vm2, %v2485_v13 }
  0x83   : > { %2153 = vmatmul.msk.bf16.gmra.mxu0 %vm328_vm2, %v2486_v14 }
  0x93   : > { %2154 = vmatmul.msk.bf16.gmra.mxu0 %vm328_vm2, %v2487_v15 }
  0xa0   : > { %v375_v18 = vpop.f32.mrf.mxu0 }
  0xa1   : > { %v429_v19 = vadd.f32 %v2897_v16, %v375_v18 }
  0xa3   : > { %v449_v20 = vmax.f32 %v429_v19, 0.0  ;;  %2155 = vmatmul.msk.bf16.gmra.mxu0 %vm328_vm2, %v2488_v17 }
  0xa5   : > { %v469_v21 = vpack.c.bf16 %v449_v20, %v449_v20 }
  0xa7   : > { %490 = vst.msk [vmem:[#allocation2] sm:$0xf] %vm489_vm3, %v469_v21 }
  0xa8   : > { %v377_v22 = vpop.f32.mrf.mxu0 }
  0xa9   : > { %v430_v23 = vadd.f32 %v2897_v16, %v377_v22 }
  0xab   : > { %v450_v24 = vmax.f32 %v430_v23, 0.0 }
  0xad   : > { %v470_v25 = vpack.c.bf16 %v450_v24, %v450_v24 }
  0xaf   : > { %491 = vst.msk [vmem:[#allocation2 + $0x4] sm:$0xf] %vm489_vm3, %v470_v25 }
  0xb0   : > { %v380_v27 = vpop.f32.mrf.mxu0 }
  0xb1   : > { %v431_v28 = vadd.f32 %v2897_v16, %v380_v27 }
  0xb3   : > { %v451_v29 = vmax.f32 %v431_v28, 0.0  ;;  %2156 = vmatmul.msk.bf16.gmra.mxu0 %vm328_vm2, %v2489_v26 }
  0xb5   : > { %v471_v30 = vpack.c.bf16 %v451_v29, %v451_v29 }
  0xb7   : > { %492 = vst.msk [vmem:[#allocation2 + $0x8] sm:$0xf] %vm489_vm3, %v471_v30 }
  0xb8   : > { %v382_v31 = vpop.f32.mrf.mxu0 }
  0xb9   : > { %v432_v32 = vadd.f32 %v2897_v16, %v382_v31 }
  0xbb   : > { %v452_v33 = vmax.f32 %v432_v32, 0.0 }
  0xbd   : > { %v472_v34 = vpack.c.bf16 %v452_v33, %v452_v33 }
  0xbf   : > { %493 = vst.msk [vmem:[#allocation2 + $0xc] sm:$0xf] %vm489_vm3, %v472_v34 }
  0xc0   : > { %v385_v35 = vpop.f32.mrf.mxu0 }
  0xc1   : > { %v433_v36 = vadd.f32 %v2897_v16, %v385_v35 }
  0xc3   : > { %v453_v37 = vmax.f32 %v433_v36, 0.0 }
  0xc5   : > { %v473_v38 = vpack.c.bf16 %v453_v37, %v453_v37 }
  0xc7   : > { %494 = vst.msk [vmem:[#allocation2 + $0x10] sm:$0xf] %vm489_vm3, %v473_v38 }
  0xc8   : > { %v387_v39 = vpop.f32.mrf.mxu0 }
  0xc9   : > { %v434_v40 = vadd.f32 %v2897_v16, %v387_v39 }
  0xcb   : > { %v454_v41 = vmax.f32 %v434_v40, 0.0 }
  0xcd   : > { %v474_v42 = vpack.c.bf16 %v454_v41, %v454_v41 }
  0xcf   : > { %495 = vst.msk [vmem:[#allocation2 + $0x14] sm:$0xf] %vm489_vm3, %v474_v42 }
  0xd0   : > { %v390_v43 = vpop.f32.mrf.mxu0 }
  0xd1   : > { %v435_v44 = vadd.f32 %v2897_v16, %v390_v43 }
  0xd3   : > { %v455_v45 = vmax.f32 %v435_v44, 0.0 }
  0xd5   : > { %v475_v46 = vpack.c.bf16 %v455_v45, %v455_v45 }
  0xd7   : > { %496 = vst.msk [vmem:[#allocation2 + $0x18] sm:$0xf] %vm489_vm3, %v475_v46 }
  0xd8   : > { %v392_v47 = vpop.f32.mrf.mxu0 }
  0xd9   : > { %v436_v48 = vadd.f32 %v2897_v16, %v392_v47 }
  0xdb   : > { %v456_v49 = vmax.f32 %v436_v48, 0.0 }
  0xdd   : > { %v476_v50 = vpack.c.bf16 %v456_v49, %v456_v49 }
  0xdf   : > { %497 = vst.msk [vmem:[#allocation2 + $0x1c] sm:$0xf] %vm489_vm3, %v476_v50 }
  0xe0   : > { %v395_v51 = vpop.f32.mrf.mxu0 }
  0xe1   : > { %v437_v52 = vadd.f32 %v2897_v16, %v395_v51 }
  0xe3   : > { %v457_v53 = vmax.f32 %v437_v52, 0.0 }
  0xe5   : > { %v477_v54 = vpack.c.bf16 %v457_v53, %v457_v53 }
  0xe7   : > { %498 = vst.msk [vmem:[#allocation2 + $0x20] sm:$0xf] %vm489_vm3, %v477_v54 }
  0xe8   : > { %v397_v55 = vpop.f32.mrf.mxu0 }
  0xe9   : > { %v438_v56 = vadd.f32 %v2897_v16, %v397_v55 }
  0xeb   : > { %v458_v57 = vmax.f32 %v438_v56, 0.0 }
  0xed   : > { %v478_v58 = vpack.c.bf16 %v458_v57, %v458_v57 }
  0xef   : > { %499 = vst.msk [vmem:[#allocation2 + $0x24] sm:$0xf] %vm489_vm3, %v478_v58 }
  0xf0   : > { %v400_v59 = vpop.f32.mrf.mxu0 }
  0xf1   : > { %v439_v60 = vadd.f32 %v2897_v16, %v400_v59 }
  0xf3   : > { %v459_v61 = vmax.f32 %v439_v60, 0.0 }
  0xf5   : > { %v479_v62 = vpack.c.bf16 %v459_v61, %v459_v61 }
  0xf7   : > { %500 = vst.msk [vmem:[#allocation2 + $0x28] sm:$0xf] %vm489_vm3, %v479_v62 }
  0xf8   : > { %v402_v63 = vpop.f32.mrf.mxu0 }
  0xf9   : > { %v440_v0 = vadd.f32 %v2897_v16, %v402_v63 }
  0xfb   : > { %v460_v1 = vmax.f32 %v440_v0, 0.0 }
  0xfd   : > { %v480_v2 = vpack.c.bf16 %v460_v1, %v460_v1 }
  0xff   : > { %501 = vst.msk [vmem:[#allocation2 + $0x2c] sm:$0xf] %vm489_vm3, %v480_v2 }
 0x100   : > { %v405_v3 = vpop.f32.mrf.mxu0 }
 0x101   : > { %v441_v4 = vadd.f32 %v2897_v16, %v405_v3 }
 0x103   : > { %v461_v5 = vmax.f32 %v441_v4, 0.0 }
 0x105   : > { %v481_v6 = vpack.c.bf16 %v461_v5, %v461_v5 }
 0x107   : > { %502 = vst.msk [vmem:[#allocation2 + $0x30] sm:$0xf] %vm489_vm3, %v481_v6 }
 0x108   : > { %v407_v7 = vpop.f32.mrf.mxu0 }
 0x109   : > { %v442_v8 = vadd.f32 %v2897_v16, %v407_v7 }
 0x10b   : > { %v462_v9 = vmax.f32 %v442_v8, 0.0 }
 0x10d   : > { %v482_v10 = vpack.c.bf16 %v462_v9, %v462_v9 }
 0x10f   : > { %503 = vst.msk [vmem:[#allocation2 + $0x34] sm:$0xf] %vm489_vm3, %v482_v10 }
 0x110   : > { %v410_v11 = vpop.f32.mrf.mxu0 }
 0x111   : > { %v443_v12 = vadd.f32 %v2897_v16, %v410_v11 }
 0x113   : > { %v463_v13 = vmax.f32 %v443_v12, 0.0 }
 0x115   : > { %v483_v14 = vpack.c.bf16 %v463_v13, %v463_v13 }
 0x117   : > { %504 = vst.msk [vmem:[#allocation2 + $0x38] sm:$0xf] %vm489_vm3, %v483_v14 }
 0x118   : > { %v412_v15 = vpop.f32.mrf.mxu0 }
 0x119   : > { %v444_v17 = vadd.f32 %v2897_v16, %v412_v15 }
 0x11b   : > { %v464_v18 = vmax.f32 %v444_v17, 0.0 }
 0x11d   : > { %v484_v19 = vpack.c.bf16 %v464_v18, %v464_v18 }
 0x11f   : > { %505 = vst.msk [vmem:[#allocation2 + $0x3c] sm:$0xf] %vm489_vm3, %v484_v19 }
 0x120   : > { %v415_v20 = vpop.f32.mrf.mxu0 }
 0x121   : > { %v445_v21 = vadd.f32 %v2897_v16, %v415_v20 }
 0x123   : > { %v465_v22 = vmax.f32 %v445_v21, 0.0 }
 0x125   : > { %v485_v23 = vpack.c.bf16 %v465_v22, %v465_v22 }
 0x127   : > { %506 = vst.msk [vmem:[#allocation2 + $0x40] sm:$0xf] %vm489_vm3, %v485_v23 }
 0x128   : > { %v417_v24 = vpop.f32.mrf.mxu0 }
 0x129   : > { %v446_v25 = vadd.f32 %v2897_v16, %v417_v24 }
 0x12b   : > { %v466_v26 = vmax.f32 %v446_v25, 0.0 }
 0x12d   : > { %v486_v27 = vpack.c.bf16 %v466_v26, %v466_v26 }
 0x12f   : > { %507 = vst.msk [vmem:[#allocation2 + $0x44] sm:$0xf] %vm489_vm3, %v486_v27 }
 0x130   : > { %v420_v28 = vpop.f32.mrf.mxu0 }
 0x131   : > { %v447_v29 = vadd.f32 %v2897_v16, %v420_v28 }
 0x133   : > { %v467_v30 = vmax.f32 %v447_v29, 0.0 }
 0x135   : > { %v487_v31 = vpack.c.bf16 %v467_v30, %v467_v30 }
 0x137   : > { %508 = vst.msk [vmem:[#allocation2 + $0x48] sm:$0xf] %vm489_vm3, %v487_v31 }
 0x138   : > { %v422_v32 = vpop.f32.mrf.mxu0 }
 0x139   : > { %v448_v33 = vadd.f32 %v2897_v16, %v422_v32 }
 0x13b   : > { %v468_v34 = vmax.f32 %v448_v33, 0.0  ;;  %513 = sbr.rel (%p2157_p13) target bundleno = 323 (0x143), region = 44 }
 0x13d   : > { %v488_v35 = vpack.c.bf16 %v468_v34, %v468_v34 }
 0x13f   : > { %509 = vst.msk [vmem:[#allocation2 + $0x4c] sm:$0xf] %vm489_vm3, %v488_v35 }
 0x140   : > { %v2750_v36 = vmov 0  }
 0x141   : > { %514 = vst.msk [vmem:[#allocation2] sm:$0xf] %vm489_vm3, %v2750_v36 }
 0x142   : > { %515 = vst.msk [vmem:[#allocation2 + $0x4] sm:$0xf] %vm489_vm3, %v2750_v36 }
 0x143 PF: > { %p2158_p0 = scmp.ne.s32.totalorder %s2731_s21, 1 }
 0x145   : > { %519 = sbr.rel (%p2158_p0) target bundleno = 333 (0x14d), region = 48 }
 0x14a   : > { %v2751_v37 = vmov 0  }
 0x14b   : > { %521 = vst.msk [vmem:[#allocation2 + $0x48] sm:$0xf] %vm489_vm3, %v2751_v37 }
 0x14c   : > { %522 = vst.msk [vmem:[#allocation2 + $0x4c] sm:$0xf] %vm489_vm3, %v2751_v37 }
 0x14d PF: > { %v2511_v16 = vld [vmem:[%s3878_s3 + $0x58] sm:$0xff]  ;;  %s2752_s8 = smov 64   ;;  %v2510_v39 = vld [vmem:[%s3878_s3 + $0x50] sm:$0xff]  ;;  %v2962_v40 = vld [vmem:[#allocation2] sm:$0xff]  ;;  %vm678_vm4 = vcmask 1047552   ;;  %vm705_vm7 = vcmask 523264  }
 0x14e   : > { %v2955_v38 = vld [vmem:[#allocation2 + $0x18] sm:$0xff]  ;;  %911 = vmatpush.bf16.msra.mxu2 %v2511_v16  ;;  %v2964_v41 = vld [vmem:[#allocation2 + $0x20] sm:$0xff]  ;;  %v583_v42 = vshll.u32 %v2962_v40, 16  ;;  %v2969_v43 = vld [vmem:[#allocation2 + $0x28] sm:$0xff]  ;;  %v580_v46 = vshrl.u32 %v2962_v40, 16  ;;  %vm643_vm8 = vcmask 1040384  }
 0x14f   : > { %1157 = vrot.lane.b32.xlu0 %v2955_v38, %s2752_s8  ;;  %1159 = vrot.lane.b32.xlu1 %v2964_v41, %s2752_s8  ;;  %v2509_v44 = vld [vmem:[%s3878_s3 + $0x48] sm:$0xff]  ;;  %v2974_v45 = vld [vmem:[#allocation2 + $0x10] sm:$0xff]  ;;  %vm679_vm5 = vsmask.f32 7424  ;;  %v2981_v48 = vld [vmem:[#allocation2 + $0x18] sm:$0xff]  ;;  %s2552_s30 = sshll.u32 %s2731_s21, 4 }
 0x150   : > { %v654_v47 = vrot.slane %v583_v42, 1  ;;  %1161 = vrot.lane.b32.xlu2 %v2969_v43, %s2752_s8  ;;  %v2508_v49 = vld [vmem:[%s3878_s3 + $0x40] sm:$0xff]  ;;  %vm2990_vm6 = vmand %vm678_vm4, %vm679_vm5  ;;  %v2998_v53 = vld [vmem:[#allocation2 + $0x30] sm:$0xff]  ;;  %v597_v4 = vshll.u32 %v2974_v45, 16  ;;  %v594_v5 = vshrl.u32 %v2974_v45, 16  ;;  %v604_v14 = vshll.u32 %v2981_v48, 16 }
 0x151   : > { %v3000_v54 = vld [vmem:[#allocation2 + $0x8] sm:$0xff]  ;;  %v3004_v56 = vld [vmem:[#allocation2 + $0x20] sm:$0xff]  ;;  %v3014_v58 = vld [vmem:[#allocation2 + $0x30] sm:$0xff]  ;;  %v601_v19 = vshrl.u32 %v2981_v48, 16  ;;  %vm644_vm9 = vsmask.f32 256 }
 0x152   : > { %912 = vmatpush.bf16.msra.mxu2 %v2510_v39  ;;  %v655_v50 = vor.u32 %v654_v47, %v580_v46  ;;  %v3002_v55 = vld [vmem:[#allocation2 + $0x28] sm:$0xff]  ;;  %v590_v57 = vshll.u32 %v3000_v54, 16  ;;  %v587_v59 = vshrl.u32 %v3000_v54, 16  ;;  %v3019_v61 = vld [vmem:[#allocation2 + $0x38] sm:$0xff]  ;;  %v3021_v62 = vld [vmem:[#allocation2 + $0x40] sm:$0xff]  ;;  %v658_v6 = vrot.slane %v597_v4, 1 }
 0x153   : > { %v3033_v1 = vld [vmem:[#allocation2 + $0x10] sm:$0xff]  ;;  %v3035_v2 = vld [vmem:[#allocation2 + $0x18] sm:$0xff]  ;;  %v3050_v7 = vld [vmem:[#allocation2 + $0x20] sm:$0xff]  ;;  %v660_v20 = vrot.slane %v604_v14, 1  ;;  %v611_v27 = vshll.u32 %v3004_v56, 16  ;;  %v608_v30 = vshrl.u32 %v3004_v56, 16 }
 0x154   : > { %v681_v52 = vsel %vm2990_vm6, %v655_v50, 0  ;;  %v656_v60 = vrot.slane %v590_v57, 1  ;;  %v3037_v3 = vld [vmem:[#allocation2 + $0x38] sm:$0xff]  ;;  %v3052_v8 = vld [vmem:[#allocation2 + $0x28] sm:$0xff]  ;;  %v659_v9 = vor.u32 %v658_v6, %v594_v5  ;;  %v3066_v12 = vld [vmem:[#allocation2 + $0x30] sm:$0xff]  ;;  %s2474_s9 = sshll.u32 %s2735_s22, 5 }
 0x155   : > { %v3064_v11 = vld [vmem:[#allocation2 + $0x8] sm:$0xff]  ;;  %v3072_v13 = vld [vmem:[%s3878_s3 + $0x98] sm:$0xff]  ;;  %v3091_v18 = vld [vmem:[%s3878_s3 + $0x90] sm:$0xff]  ;;  %v661_v23 = vor.u32 %v660_v20, %v601_v19  ;;  %v662_v31 = vrot.slane %v611_v27, 1  ;;  %s2005_s10 = sadd.s32 %s2552_s30, %s2474_s9  ;;  %s2008_s15 = sshll.u32 %s2944_s27, 4  ;;  %s2009_s15 = int_to_ptr.vmem [resolvable:$true] %s2008_s15 }
 0x156   : > { %913 = vmatpush.bf16.msra.mxu2 %v2509_v44  ;;  %v657_v63 = vor.u32 %v656_v60, %v587_v59  ;;  %v683_v10 = vsel %vm2990_vm6, %v659_v9, 0  ;;  %v3082_v15 = vld [vmem:[%s3878_s3 + $0xb8] sm:$0xff]  ;;  %2561 = vmatpush.bf16.msra.mxu3 %v3072_v13  ;;  %v3099_v21 = vld [vmem:[#allocation2 + $0x10] sm:$0xff]  ;;  %v2525_v22 = vld [vmem:[%s3878_s3 + $0x88] sm:$0xff]  ;;  %v618_v44 = vshll.u32 %v3002_v55, 16  ;;  %s2475_s13 = sshll.u32 %s2005_s10, 3 }
 0x157   : > { %693 = vrot.lane.b32.xlu0 %v2974_v45, %s2752_s8  ;;  %695 = vrot.lane.b32.xlu1 %v2981_v48, %s2752_s8  ;;  %v2507_v17 = vld [vmem:[%s3878_s3 + $0x38] sm:$0xff]  ;;  %v684_v24 = vsel %vm2990_vm6, %v661_v23, 0  ;;  %v2506_v25 = vld [vmem:[%s3878_s3 + $0x30] sm:$0xff]  ;;  %v663_v34 = vor.u32 %v662_v31, %v608_v30  ;;  %vm3218_vm10 = vmand %vm643_vm8, %vm644_vm9  ;;  %v1081_v48 = vshll.u32 %v2969_v43, 16  ;;  %s2007_s22 = scalar_lea.hbm %s3880_s5, %s2475_s13  ;;  %s1993_s26 = scalar_lea.sflag [#allocation4], %s229_s12 }
 0x158   : > { %697 = vrot.lane.b32.xlu2 %v3004_v56, %s2752_s8  ;;  %v682_v0 = vsel %vm2990_vm6, %v657_v63, 0  ;;  %2553 = vmatpush.bf16.msra.mxu1 %v2507_v17  ;;  %v2524_v26 = vld [vmem:[%s3878_s3 + $0x80] sm:$0xff]  ;;  %v2505_v28 = vld [vmem:[%s3878_s3 + $0x28] sm:$0xff]  ;;  %v2523_v29 = vld [vmem:[%s3878_s3 + $0x78] sm:$0xff]  ;;  %v664_v50 = vrot.slane %v618_v44, 1  ;;  %v1088_v56 = vshll.u32 %v2998_v53, 16 }
 0x159   : > { %858 = vmatpush.bf16.msrb.mxu0 %v2507_v17  ;;  %v2504_v32 = vld [vmem:[%s3878_s3 + $0x20] sm:$0xff]  ;;  %v2522_v33 = vld [vmem:[%s3878_s3 + $0x70] sm:$0xff]  ;;  %v2503_v35 = vld [vmem:[%s3878_s3 + $0x18] sm:$0xff]  ;;  %v685_v37 = vsel %vm2990_vm6, %v663_v34, 0  ;;  %v622_v17 = vshrl.u32 %v3014_v58, 16  ;;  %s2010_s16 = sshll.u32 %s2007_s22, 4  ;;  %s2011_s16 = int_to_ptr.hbm [resolvable:$true] %s2010_s16 }
 0x15a   : > { %914 = vmatpush.bf16.msra.mxu2 %v2508_v49  ;;  %2562 = vmatpush.bf16.msra.mxu3 %v3091_v18  ;;  %v3142_v36 = vld [vmem:[%s3878_s3 + $0x68] sm:$0xff]  ;;  %v2502_v16 = vld [vmem:[%s3878_s3 + $0x10] sm:$0xff]  ;;  %v3154_v39 = vld [vmem:[%s3878_s3 + $0x60] sm:$0xff]  ;;  %v615_v49 = vshrl.u32 %v3002_v55, 16  ;;  %s2673_s10 = scalar_lea.hbm %s3880_s5, 512 }
 0x15b   : > { %v2501_v47 = vld [vmem:[%s3878_s3 + $0x8] sm:$0xff]  ;;  %v2500_v60 = vld [vmem:[%s3878_s3] sm:$0xff]  ;;  %v3178_v6 = vld [vmem:[%s3878_s3 + $0xb0] sm:$0xff] }
 0x15c   : > { %2554 = vmatpush.bf16.msra.mxu1 %v2506_v25  ;;  %v665_v63 = vor.u32 %v664_v50, %v615_v49  ;;  %v2547_v9 = vld [vmem:[%s3878_s3 + $0xf8] sm:$0xff]  ;;  %v3194_v23 = vld [vmem:[%s3878_s3 + $0xa8] sm:$0xff] }
 0x15d   : > { %2239 = vmatmul.msk.bf16.vlgmr.msra.gmra.mxu2 %vm705_vm7, %v681_v52  ;;  %859 = vmatpush.bf16.msrb.mxu0 %v2506_v25  ;;  %v2551_v52 = vld [vmem:[%s3878_s3 + $0x118] sm:$0xff]  ;;  %v1067_v25 = vshll.u32 %v2955_v38, 16 }
 0x15e   : > { %2569 = vmatpush.bf16.msrb.mxu2 %v3082_v15  ;;  %2563 = vmatpush.bf16.msra.mxu3 %v2525_v22 }
 0x15f   : > { %1163 = vrot.lane.b32.xlu0 %v2998_v53, %s2752_s8  ;;  %699 = vrot.lane.b32.xlu1 %v3002_v55, %s2752_s8 }
 0x160   : > { %1165 = vrot.lane.b32.xlu2 %v3019_v61, %s2752_s8  ;;  %2555 = vmatpush.bf16.msra.mxu1 %v2505_v28 }
 0x161   : > { %860 = vmatpush.bf16.msrb.mxu0 %v2505_v28  ;;  %v3208_v28 = vld [vmem:[%s3878_s3 + $0xa0] sm:$0xff] }
 0x162   : > { %2564 = vmatpush.bf16.msra.mxu3 %v2524_v26  ;;  %2570 = vmatpush.bf16.msrb.mxu2 %v3178_v6 }
 0x164   : > { %2556 = vmatpush.bf16.msra.mxu1 %v2504_v32 }
 0x165   : > { %861 = vmatpush.bf16.msrb.mxu0 %v2504_v32  ;;  %v2550_v32 = vld [vmem:[%s3878_s3 + $0x110] sm:$0xff] }
 0x166   : > { %2565 = vmatpush.bf16.msra.mxu3 %v2523_v29  ;;  %2571 = vmatpush.bf16.msrb.mxu2 %v3194_v23 }
 0x167   : > { %701 = vrot.lane.b32.xlu0 %v3014_v58, %s2752_s8  ;;  %1167 = vrot.lane.b32.xlu1 %v3021_v62, %s2752_s8 }
 0x168   : > { %703 = vrot.lane.b32.xlu2 %v3037_v3, %s2752_s8  ;;  %2557 = vmatpush.bf16.msra.mxu1 %v2503_v35 }
 0x169   : > { %862 = vmatpush.bf16.msrb.mxu0 %v2503_v35  ;;  %v596_v35 = vrot.slane %v594_v5, 7  ;;  %v2545_v5 = vld [vmem:[%s3878_s3 + $0xe8] sm:$0xff] }
 0x16a   : > { %2566 = vmatpush.bf16.msra.mxu3 %v2522_v33  ;;  %2572 = vmatpush.bf16.msrb.mxu2 %v3208_v28 }
 0x16c   : > { %2558 = vmatpush.bf16.msra.mxu1 %v2502_v16 }
 0x16d   : > { %2240 = vmatmul.msk.bf16.gmra.mxu2 %vm705_vm7, %v682_v0  ;;  %863 = vmatpush.bf16.msrb.mxu0 %v2502_v16  ;;  %v686_v0 = vsel %vm2990_vm6, %v665_v63, 0  ;;  %v1071_v16 = vshrl.u32 %v2964_v41, 16 }
 0x16e   : > { %2567 = vmatpush.bf16.msra.mxu3 %v3142_v36 }
 0x16f   : > { %1629 = vrot.lane.b32.xlu0 %v3033_v1, %s2752_s8  ;;  %1631 = vrot.lane.b32.xlu1 %v3035_v2, %s2752_s8 }
 0x170   : > { %1633 = vrot.lane.b32.xlu2 %v3050_v7, %s2752_s8  ;;  %2559 = vmatpush.bf16.msra.mxu1 %v2501_v47 }
 0x171   : > { %864 = vmatpush.bf16.msrb.mxu0 %v2501_v47 }
 0x172   : > { %2568 = vmatpush.bf16.msra.mxu3 %v3154_v39 }
 0x174   : > { %2560 = vmatpush.bf16.msra.mxu1 %v2500_v60 }
 0x175   : > { %865 = vmatpush.bf16.msrb.mxu0 %v2500_v60  ;;  %v629_v60 = vshrl.u32 %v3037_v3, 16 }
 0x176   : > { %1851 = vmatpush.bf16.msrb.mxu3 %v2551_v52 }
 0x177   : > { %689 = vrot.lane.b32.xlu0 %v2962_v40, %s2752_s8  ;;  %1635 = vrot.lane.b32.xlu1 %v3052_v8, %s2752_s8 }
 0x178   : > { %691 = vrot.lane.b32.xlu2 %v3000_v54, %s2752_s8  ;;  %1798 = vmatpush.bf16.msrb.mxu1 %v2547_v9  ;;  %v1074_v9 = vshll.u32 %v2964_v41, 16 }
 0x179   : > { %1322 = vmatpush.bf16.msra.mxu0 %v3072_v13  ;;  %v1064_v13 = vshrl.u32 %v2955_v38, 16  ;;  %v2548_v38 = vld [vmem:[%s3878_s3 + $0x100] sm:$0xff] }
 0x17a   : > { %1852 = vmatpush.bf16.msrb.mxu3 %v2550_v32  ;;  %v2544_v32 = vld [vmem:[%s3878_s3 + $0xe0] sm:$0xff] }
 0x17d   : > { %2241 = vmatmul.msk.bf16.gmra.mxu2 %vm705_vm7, %v683_v10  ;;  %1323 = vmatpush.bf16.msra.mxu0 %v3091_v18  ;;  %v625_v10 = vshll.u32 %v3014_v58, 16 }
 0x17f   : > { %1637 = vrot.lane.b32.xlu0 %v3066_v12, %s2752_s8  ;;  %1153 = vrot.lane.b32.xlu1 %v3064_v11, %s2752_s8  ;;  %v666_v20 = vrot.slane %v625_v10, 1 }
 0x181   : > { %1324 = vmatpush.bf16.msra.mxu0 %v2525_v22  ;;  %v667_v18 = vor.u32 %v666_v20, %v622_v17  ;;  %v1066_v22 = vrot.slane %v1064_v13, 7 }
 0x183   : > { %v687_v31 = vsel %vm2990_vm6, %v667_v18, 0 }
 0x185   : > { %1325 = vmatpush.bf16.msra.mxu0 %v2524_v26  ;;  %v1069_v26 = vor.u32 %v1067_v25, %v1066_v22 }
 0x187   : > { %1155 = vrot.lane.b32.xlu0 %v3099_v21, %s2752_s8 }
 0x189   : > { %1326 = vmatpush.bf16.msra.mxu0 %v2523_v29  ;;  %v1115_v29 = vsel %vm3218_vm10, 0, %v1069_v26  ;;  %v603_v26 = vrot.slane %v601_v19, 7  ;;  %v1057_v19 = vshrl.u32 %v3099_v21, 16 }
 0x18d   : > { %2242 = vmatmul.msk.bf16.gmra.mxu2 %vm705_vm7, %v684_v24  ;;  %v2546_v24 = vld [vmem:[%s3878_s3 + $0xf0] sm:$0xff]  ;;  %1327 = vmatpush.bf16.msra.mxu0 %v2522_v33  ;;  %v599_v33 = vor.u32 %v597_v4, %v596_v35 }
 0x18e   : > { %1799 = vmatpush.bf16.msrb.mxu1 %v2546_v24 }
 0x18f   : > { %v648_v45 = vsel %vm3218_vm10, 0, %v599_v33  ;;  %v606_v33 = vor.u32 %v604_v14, %v603_v26 }
 0x191   : > { %1328 = vmatpush.bf16.msra.mxu0 %v3142_v36 }
 0x192   : > { %1800 = vmatpush.bf16.msrb.mxu1 %v2545_v5  ;;  %v2549_v5 = vld [vmem:[%s3878_s3 + $0x108] sm:$0xff] }
 0x193   : > { %1853 = vmatpush.bf16.msrb.mxu3 %v2549_v5 }
 0x195   : > { %1329 = vmatpush.bf16.msra.mxu0 %v3154_v39 }
 0x196   : > { %1801 = vmatpush.bf16.msrb.mxu1 %v2544_v32 }
 0x197   : > { %1854 = vmatpush.bf16.msrb.mxu3 %v2548_v38  ;;  %v2540_v38 = vld [vmem:[%s3878_s3 + $0xc0] sm:$0xff] }
 0x19d   : > { %2243 = vmatmul.msk.bf16.gmra.mxu2 %vm705_vm7, %v685_v37  ;;  %v632_v37 = vshll.u32 %v3037_v3, 16 }
 0x19f   : > { %v668_v63 = vrot.slane %v632_v37, 1 }
 0x1a1   : > { %v669_v4 = vor.u32 %v668_v63, %v629_v60 }
 0x1a3   : > { %v688_v18 = vsel %vm2990_vm6, %v669_v4, 0 }
 0x1aa   : > { %v1162_v52 = vpop.permute.xlu2 %1161 }
 0x1ad   : > { %2244 = vmatmul.msk.bf16.gmra.mxu2 %vm705_vm7, %v686_v0  ;;  %v1073_v0 = vrot.slane %v1071_v16, 7 }
 0x1af   : > { %v1076_v20 = vor.u32 %v1074_v9, %v1073_v0 }
 0x1b1   : > { %v1116_v39 = vsel %vm3218_vm10, 0, %v1076_v20 }
 0x1bd   : > { %2245 = vmatmul.msk.bf16.gmra.mxu2 %vm705_vm7, %v687_v31  ;;  %v698_v31 = vpop.permute.xlu2 %697 }
 0x1c1   : > { %v1158_v47 = vpop.permute.xlu0 %1157  ;;  %v1160_v22 = vpop.permute.xlu1 %1159 }
 0x1c2   : > { %v1179_v50 = vsel %vm705_vm7, %v1115_v29, %v1158_v47  ;;  %v1060_v29 = vshll.u32 %v3099_v21, 16  ;;  %v1183_v35 = vsel %vm705_vm7, %v1116_v39, %v1160_v22  ;;  %v1078_v47 = vshrl.u32 %v2969_v43, 16  ;;  %v2543_v39 = vld [vmem:[%s3878_s3 + $0xd8] sm:$0xff] }
 0x1c3   : > { %1340 = vmatmul.bf16.vlgmr.msra.gmra.mxu3 %v1179_v50  ;;  %1802 = vmatpush.bf16.msrb.mxu1 %v2543_v39 }
 0x1c4   : > { %v1123_v63 = vrot.slane %v1060_v29, 1  ;;  %v1080_v4 = vrot.slane %v1078_v47, 7 }
 0x1c5   : > { %v3276_v14 = vpop.permute.xlu2 %1165 }
 0x1c9   : > { %v694_v36 = vpop.permute.xlu0 %693  ;;  %v696_v0 = vpop.permute.xlu1 %695 }
 0x1ca   : > { %v716_v24 = vsel %vm705_vm7, %v648_v45, %v694_v36  ;;  %v649_v45 = vsel %vm3218_vm10, 0, %v606_v33  ;;  %v1124_v36 = vor.u32 %v1123_v63, %v1057_v19  ;;  %v582_v33 = vrot.slane %v580_v46, 7 }
 0x1cb   : > { %876 = vmatmul.bf16.vlgmr.msra.gmra.mxu1 %v716_v24  ;;  %v720_v20 = vsel %vm705_vm7, %v649_v45, %v696_v0  ;;  %v1085_v0 = vshrl.u32 %v2998_v53, 16  ;;  %v1125_v46 = vrot.slane %v1067_v25, 1 }
 0x1cc   : > { %v1146_v22 = vsel %vm2990_vm6, %v1124_v36, 0 }
 0x1cd   : > { %2246 = vmatmul.msk.bf16.gmra.mxu2 %vm705_vm7, %v688_v18  ;;  %v1083_v18 = vor.u32 %v1081_v48, %v1080_v4  ;;  %v3298_v5 = vpop.permute.xlu2 %703 }
 0x1cf   : > { %v1117_v26 = vsel %vm3218_vm10, 0, %v1083_v18  ;;  %v1087_v18 = vrot.slane %v1085_v0, 7 }
 0x1d0   : > { %v1187_v63 = vsel %vm705_vm7, %v1117_v26, %v1162_v52  ;;  %v2542_v52 = vld [vmem:[%s3878_s3 + $0xd0] sm:$0xff] }
 0x1d1   : > { %v1164_v50 = vpop.permute.xlu0 %1163  ;;  %v700_v32 = vpop.permute.xlu1 %699  ;;  %1803 = vmatpush.bf16.msrb.mxu1 %v2542_v52  ;;  %v1090_v26 = vor.u32 %v1088_v56, %v1087_v18 }
 0x1d3   : > { %1345 = vmatmul.bf16.gmra.mxu3 %v1183_v35  ;;  %v610_v35 = vrot.slane %v608_v30, 7  ;;  %v585_v30 = vor.u32 %v583_v42, %v582_v33  ;;  %v1126_v42 = vor.u32 %v1125_v46, %v1064_v13  ;;  %v1118_v13 = vsel %vm3218_vm10, 0, %v1090_v26 }
 0x1d4   : > { %v1092_v46 = vshrl.u32 %v3019_v61, 16 }
 0x1d5   : > { %v613_v36 = vor.u32 %v611_v27, %v610_v35  ;;  %v646_v40 = vsel %vm3218_vm10, 0, %v585_v30  ;;  %v1147_v33 = vsel %vm2990_vm6, %v1126_v42, 0  ;;  %v1191_v30 = vsel %vm705_vm7, %v1118_v13, %v1164_v50  ;;  %v3362_v50 = vld [vmem:[#allocation2 + $0x40] sm:$0xff] }
 0x1d6   : > { %1641 = vrot.lane.b32.xlu1 %v3362_v50, %s2752_s8  ;;  %v1050_v42 = vshrl.u32 %v3064_v11, 16 }
 0x1d9   : > { %v3281_v24 = vpop.permute.xlu0 %701  ;;  %v3323_v27 = vpop.permute.xlu1 %1167 }
 0x1db   : > { %881 = vmatmul.bf16.gmra.mxu1 %v720_v20  ;;  %v650_v20 = vsel %vm3218_vm10, 0, %v613_v36  ;;  %v617_v36 = vrot.slane %v615_v49, 7  ;;  %v1127_v49 = vrot.slane %v1074_v9, 1 }
 0x1dc   : > { %v724_v25 = vsel %vm705_vm7, %v650_v20, %v698_v31  ;;  %v589_v31 = vrot.slane %v587_v59, 7 }
 0x1dd   : > { %2352 = vmatmul.msk.bf16.vlgmr.msrb.gmra.mxu2 %vm705_vm7, %v1146_v22  ;;  %v620_v59 = vor.u32 %v618_v44, %v617_v36  ;;  %v1095_v44 = vshll.u32 %v3019_v61, 16  ;;  %v1128_v9 = vor.u32 %v1127_v49, %v1071_v16 }
 0x1de   : > { %v592_v20 = vor.u32 %v590_v57, %v589_v31  ;;  %v1094_v57 = vrot.slane %v1092_v46, 7 }
 0x1df   : > { %v651_v55 = vsel %vm3218_vm10, 0, %v620_v59  ;;  %v1148_v26 = vsel %vm2990_vm6, %v1128_v9, 0 }
 0x1e0   : > { %v3303_v4 = vpop.f32.mrf.mxu2  ;;  %v647_v54 = vsel %vm3218_vm10, 0, %v592_v20  ;;  %v1129_v20 = vrot.slane %v1081_v48, 1 }
 0x1e1   : > { %v3301_v45 = vpop.permute.xlu0 %1629 }
 0x1e2   : > { %v1130_v58 = vor.u32 %v1129_v20, %v1078_v47  ;;  %v631_v47 = vrot.slane %v629_v60, 7  ;;  %v1131_v60 = vrot.slane %v1088_v56, 1  ;;  %v1133_v20 = vrot.slane %v1095_v44, 1 }
 0x1e3   : > { %1350 = vmatmul.bf16.gmra.mxu3 %v1187_v63  ;;  %v3333_v63 = vpop.permute.xlu2 %1633 }
 0x1e4   : > { %v1132_v3 = vor.u32 %v1131_v60, %v1085_v0 }
 0x1e8   : > { %v3326_v39 = vpop.f32.mrf.mxu2 }
 0x1e9   : > { %v690_v22 = vpop.permute.xlu0 %689 }
 0x1ea   : > { %v708_v35 = vsel %vm705_vm7, %v646_v40, %v690_v22  ;;  %v728_v40 = vsel %vm705_vm7, %v651_v55, %v700_v32  ;;  %v1097_v22 = vor.u32 %v1095_v44, %v1094_v57  ;;  %v1052_v32 = vrot.slane %v1050_v42, 7 }
 0x1eb   : > { %866 = vmatmul.bf16.vlgmr.msrb.gmra.mxu0 %v708_v35  ;;  %886 = vmatmul.bf16.gmra.mxu1 %v724_v25  ;;  %v692_v18 = vpop.permute.xlu2 %691  ;;  %v1053_v35 = vshll.u32 %v3064_v11, 16  ;;  %v1149_v57 = vsel %vm2990_vm6, %v1130_v58, 0 }
 0x1ec   : > { %1375 = vmatpush.bf16.msrb.mxu0 %v3082_v15  ;;  %v3351_v15 = vpop.permute.xlu1 %1631  ;;  %v1119_v16 = vsel %vm3218_vm10, 0, %v1097_v22  ;;  %v634_v22 = vor.u32 %v632_v37, %v631_v47 }
 0x1ed   : > { %2353 = vmatmul.msk.bf16.gmra.mxu2 %vm705_vm7, %v1147_v33  ;;  %v3395_v33 = vld [vmem:[#allocation2 + $0x38] sm:$0xff]  ;;  %v1195_v13 = vsel %vm705_vm7, %v1119_v16, %v3276_v14  ;;  %v1529_v16 = vshll.u32 %v3033_v1, 16 }
 0x1ee   : > { %1639 = vrot.lane.b32.xlu2 %v3395_v33, %s2752_s8 }
 0x1ef   : > { %v1597_v56 = vrot.slane %v1529_v16, 1 }
 0x1f0   : > { %1376 = vmatpush.bf16.msrb.mxu0 %v3178_v6  ;;  %v3349_v52 = vpop.f32.mrf.mxu2  ;;  %v2541_v6 = vld [vmem:[%s3878_s3 + $0xc8] sm:$0xff] }
 0x1f1   : > { %1804 = vmatpush.bf16.msrb.mxu1 %v2541_v6  ;;  %v3430_v9 = vpop.permute.xlu0 %1637 }
 0x1f3   : > { %1355 = vmatmul.bf16.gmra.mxu3 %v1191_v30  ;;  %v1055_v30 = vor.u32 %v1053_v35, %v1052_v32 }
 0x1f4   : > { %1377 = vmatpush.bf16.msrb.mxu0 %v3194_v23  ;;  %v712_v23 = vsel %vm705_vm7, %v647_v54, %v692_v18  ;;  %v3386_v41 = vpop.permute.xlu1 %1635  ;;  %v1102_v18 = vshll.u32 %v3021_v62, 16 }
 0x1f5   : > { %1805 = vmatpush.bf16.msrb.mxu1 %v2540_v38  ;;  %v1113_v14 = vsel %vm3218_vm10, 0, %v1055_v30  ;;  %v1150_v38 = vsel %vm2990_vm6, %v1132_v3, 0  ;;  %v3464_v30 = vld [vmem:[#allocation2 + $0x48] sm:$0xff] }
 0x1f6   : > { %1643 = vrot.lane.b32.xlu2 %v3464_v30, %s2752_s8  ;;  %s2667_s8 = sshra.s32 %s2011_s16, 4  ;;  %s2668_s8 = int_to_ptr.hbm [resolvable:$true] %s2667_s8 }
 0x1f7   : > { %s2669_s17 = scalar_lea.hbm %s2668_s8, 128  ;;  %p2674_p5 = scmp.lt.s32.totalorder %s2668_s8, %s3880_s5 }
 0x1f8   : > { %1378 = vmatpush.bf16.msrb.mxu0 %v3208_v28  ;;  %v3380_v25 = vpop.f32.mrf.mxu2  ;;  %v624_v28 = vrot.slane %v622_v17, 7  ;;  %v1099_v17 = vshrl.u32 %v3021_v62, 16  ;;  %p2670_p1 = scmp.ne.s32.totalorder %s2668_s8, %s2669_s17  ;;  %p2675_p6 = scmp.lt.s32.totalorder %s2673_s10, %s2669_s17 }
 0x1fa   : > { %v627_v36 = vor.u32 %v625_v10, %v624_v28  ;;  %v1101_v6 = vrot.slane %v1099_v17, 7  ;;  %v653_v28 = vsel %vm3218_vm10, 0, %v634_v22  ;;  %p2671_p2 = pnand %p2670_p1, %p2836_p3  ;;  %p2676_p7 = por %p2675_p6, %p2674_p5 }
 0x1fb   : > { %871 = vmatmul.bf16.gmra.mxu0 %v712_v23  ;;  %891 = vmatmul.bf16.gmra.mxu1 %v728_v40  ;;  %v736_v21 = vsel %vm705_vm7, %v653_v28, %v3298_v5 }
 0x1fc   : > { %v1154_v59 = vpop.permute.xlu1 %1153  ;;  %v652_v49 = vsel %vm3218_vm10, 0, %v627_v36  ;;  %v1104_v55 = vor.u32 %v1102_v18, %v1101_v6  ;;  %v1134_v6 = vor.u32 %v1133_v20, %v1092_v46  ;;  %p2672_p4 = pneg %p2671_p2 }
 0x1fd   : > { %2354 = vmatmul.msk.bf16.gmra.mxu2 %vm705_vm7, %v1148_v26  ;;  %v732_v10 = vsel %vm705_vm7, %v652_v49, %v3281_v24  ;;  %v1171_v48 = vsel %vm705_vm7, %v1113_v14, %v1154_v59  ;;  %v1059_v24 = vrot.slane %v1057_v19, 7  ;;  %v1156_v19 = vpop.permute.xlu0 %1155  ;;  %v1536_v49 = vshll.u32 %v3035_v2, 16 }
 0x1fe   : > { %v1120_v43 = vsel %vm3218_vm10, 0, %v1104_v55  ;;  %v1151_v11 = vsel %vm2990_vm6, %v1134_v6, 0  ;;  %p2677_p9 = pnand %p2676_p7, %p2672_p4 }
 0x1ff   : > { %v1199_v23 = vsel %vm705_vm7, %v1120_v43, %v3323_v27  ;;  %v1062_v26 = vor.u32 %v1060_v29, %v1059_v24  ;;  %v1526_v29 = vshrl.u32 %v3033_v1, 16  ;;  %v1121_v1 = vrot.slane %v1053_v35, 1 }
 0x200   : > { %v3406_v31 = vpop.f32.mrf.mxu2  ;;  %v1599_v44 = vrot.slane %v1536_v49, 1 }
 0x201   : > { %v1114_v27 = vsel %vm3218_vm10, 0, %v1062_v26  ;;  %v1528_v36 = vrot.slane %v1526_v29, 7  ;;  %v1122_v59 = vor.u32 %v1121_v1, %v1050_v42 }
 0x202   : > { %v1175_v37 = vsel %vm705_vm7, %v1114_v27, %v1156_v19  ;;  %v3527_v27 = vld [vmem:[%s3879_s4] ss:$0 sm:$0xff] }
 0x203   : > { %1360 = vmatmul.bf16.gmra.mxu3 %v1195_v13  ;;  %v1598_v13 = vor.u32 %v1597_v56, %v1526_v29  ;;  %v1531_v0 = vor.u32 %v1529_v16, %v1528_v36  ;;  %v1145_v35 = vsel %vm2990_vm6, %v1122_v59, 0 }
 0x205   : > { %v1621_v53 = vsel %vm2990_vm6, %v1598_v13, 0  ;;  %v1589_v14 = vsel %vm3218_vm10, 0, %v1531_v0 }
 0x206   : > { %v1647_v58 = vsel %vm705_vm7, %v1589_v14, %v3301_v45 }
 0x208   : > { %v3424_v54 = vpop.f32.mrf.mxu2 }
 0x20b   : > { %896 = vmatmul.bf16.gmra.mxu1 %v732_v10  ;;  %1330 = vmatmul.bf16.vlgmr.msra.gmra.mxu0 %v1171_v48  ;;  %v1533_v10 = vshrl.u32 %v3035_v2, 16  ;;  %v1135_v2 = vrot.slane %v1102_v18, 1 }
 0x20d   : > { %2355 = vmatmul.msk.bf16.gmra.mxu2 %vm705_vm7, %v1149_v57  ;;  %v1600_v42 = vor.u32 %v1599_v44, %v1533_v10  ;;  %v1535_v61 = vrot.slane %v1533_v10, 7  ;;  %v1543_v57 = vshll.u32 %v3050_v7, 16  ;;  %v1136_v47 = vor.u32 %v1135_v2, %v1099_v17 }
 0x20f   : > { %v1622_v46 = vsel %vm2990_vm6, %v1600_v42, 0  ;;  %v1538_v45 = vor.u32 %v1536_v49, %v1535_v61  ;;  %v1601_v22 = vrot.slane %v1543_v57, 1  ;;  %v1152_v18 = vsel %vm2990_vm6, %v1136_v47, 0 }
 0x210   : > { %v3441_v40 = vpop.f32.mrf.mxu2  ;;  %v1557_v49 = vshll.u32 %v3066_v12, 16  ;;  %v1564_v47 = vshll.u32 %v3395_v33, 16 }
 0x211   : > { %v1590_v43 = vsel %vm3218_vm10, 0, %v1538_v45 }
 0x212   : > { %v1651_v24 = vsel %vm705_vm7, %v1590_v43, %v3351_v15  ;;  %v1605_v10 = vrot.slane %v1557_v49, 1 }
 0x213   : > { %1365 = vmatmul.bf16.gmra.mxu3 %v1199_v23  ;;  %v1540_v23 = vshrl.u32 %v3050_v7, 16  ;;  %v1550_v7 = vshll.u32 %v3052_v8, 16 }
 0x215   : > { %v1602_v60 = vor.u32 %v1601_v22, %v1540_v23  ;;  %v1542_v16 = vrot.slane %v1540_v23, 7  ;;  %v1603_v29 = vrot.slane %v1550_v7, 1 }
 0x217   : > { %v1623_v62 = vsel %vm2990_vm6, %v1602_v60, 0  ;;  %v1545_v15 = vor.u32 %v1543_v57, %v1542_v16  ;;  %v1561_v60 = vshrl.u32 %v3395_v33, 16  ;;  %v1607_v16 = vrot.slane %v1564_v47, 1 }
 0x218   : > { %v3460_v32 = vpop.f32.mrf.mxu2 }
 0x219   : > { %v1591_v19 = vsel %vm3218_vm10, 0, %v1545_v15 }
 0x21b   : > { %901 = vmatmul.bf16.gmra.mxu1 %v736_v21  ;;  %1335 = vmatmul.bf16.gmra.mxu0 %v1175_v37  ;;  %v1655_v21 = vsel %vm705_vm7, %v1591_v19, %v3333_v63  ;;  %v1547_v37 = vshrl.u32 %v3052_v8, 16 }
 0x21d   : > { %2356 = vmatmul.msk.bf16.gmra.mxu2 %vm705_vm7, %v1150_v38  ;;  %v1604_v36 = vor.u32 %v1603_v29, %v1547_v37 }
 0x21f   : > { %v1624_v63 = vsel %vm2990_vm6, %v1604_v36, 0 }
 0x220   : > { %v3471_v5 = vpop.f32.mrf.mxu2 }
 0x223   : > { %2463 = vmatmul.msk.bf16.vlgmr.msrb.gmra.mxu3 %vm705_vm7, %v1621_v53  ;;  %v1549_v53 = vrot.slane %v1547_v37, 7  ;;  %v1563_v37 = vrot.slane %v1561_v60, 7 }
 0x225   : > { %v1566_v36 = vor.u32 %v1564_v47, %v1563_v37 }
 0x228   : > { %v3488_v48 = vpop.f32.mrf.mxu2 }
 0x22b   : > { %2351 = vmatmul.msk.bf16.vlgmr.msrb.gmra.mxu0 %vm705_vm7, %v1145_v35  ;;  %1806 = vmatmul.bf16.vlgmr.msrb.gmra.mxu1 %v1647_v58  ;;  %v1554_v58 = vshrl.u32 %v3066_v12, 16 }
 0x22d   : > { %2357 = vmatmul.msk.bf16.gmra.mxu2 %vm705_vm7, %v1151_v11  ;;  %v1606_v61 = vor.u32 %v1605_v10, %v1554_v58 }
 0x230   : > { %v3496_v55 = vpop.f32.mrf.mxu2 }
 0x233   : > { %2464 = vmatmul.msk.bf16.gmra.mxu3 %vm705_vm7, %v1622_v46  ;;  %v1556_v46 = vrot.slane %v1554_v58, 7 }
 0x238   : > { %v3509_v26 = vpop.f32.mrf.mxu2 }
 0x23b   : > { %1811 = vmatmul.bf16.gmra.mxu1 %v1651_v24 }
 0x23d   : > { %2358 = vmatmul.msk.bf16.gmra.mxu2 %vm705_vm7, %v1152_v18 }
 0x240   : > { %v3516_v17 = vpop.f32.mrf.mxu2 }
 0x243   : > { %2465 = vmatmul.msk.bf16.gmra.mxu3 %vm705_vm7, %v1623_v62 }
 0x246   : > { %v3522_v28 = vpop.f32.mrf.mxu3 }
 0x248   : > { %v877_v3 = vpop.f32.mrf.mxu1  ;;  %v3533_v38 = vpop.f32.mrf.mxu2 }
 0x249   : > { %v927_v56 = vadd.f32 %v3406_v31, %v877_v3  ;;  %v1552_v31 = vor.u32 %v1550_v7, %v1549_v53 }
 0x24b   : > { %v964_v13 = vadd.f32 %v3527_v27, %v927_v56  ;;  %1816 = vmatmul.bf16.gmra.mxu1 %v1655_v21  ;;  %v1592_v14 = vsel %vm3218_vm10, 0, %v1552_v31  ;;  %v1608_v21 = vor.u32 %v1607_v16, %v1561_v60  ;;  %v1571_v31 = vshll.u32 %v3362_v50, 16 }
 0x24d   : > { %980 = vst.msk [vmem:[%s2944_s27 + $0x20] sm:$0xff] %vm705_vm7, %v964_v13  ;;  %v1609_v58 = vrot.slane %v1571_v31, 1 }
 0x24e   : > { %v3538_v1 = vpop.f32.mrf.mxu3 }
 0x250   : > { %v879_v0 = vpop.f32.mrf.mxu1  ;;  %v3543_v20 = vpop.f32.mrf.mxu2 }
 0x251   : > { %v929_v8 = vadd.f32 %v3424_v54, %v879_v0  ;;  %v1659_v54 = vsel %vm705_vm7, %v1592_v14, %v3386_v41  ;;  %v1625_v41 = vsel %vm2990_vm6, %v1606_v61, 0 }
 0x253   : > { %v965_v59 = vadd.f32 %v3527_v27, %v929_v8  ;;  %2466 = vmatmul.msk.bf16.gmra.mxu3 %vm705_vm7, %v1624_v63 }
 0x254   : > { %v1424_v8 = vld [vmem:[%s2944_s27 + $0x20] sm:$0xff] }
 0x255   : > { %981 = vst.msk [vmem:[%s2944_s27 + $0x28] sm:$0xff] %vm705_vm7, %v965_v59 }
 0x256   : > { %v3552_v6 = vpop.f32.mrf.mxu3 }
 0x258   : > { %v882_v35 = vpop.f32.mrf.mxu1  ;;  %v3558_v11 = vpop.f32.mrf.mxu2 }
 0x259   : > { %v932_v44 = vadd.f32 %v3441_v40, %v882_v35  ;;  %v1559_v40 = vor.u32 %v1557_v49, %v1556_v46 }
 0x25b   : > { %v966_v42 = vadd.f32 %v3527_v27, %v932_v44  ;;  %1821 = vmatmul.bf16.gmra.mxu1 %v1659_v54  ;;  %v1593_v24 = vsel %vm3218_vm10, 0, %v1559_v40  ;;  %v1568_v54 = vshrl.u32 %v3362_v50, 16 }
 0x25c   : > { %v1663_v18 = vsel %vm705_vm7, %v1593_v24, %v3430_v9 }
 0x25d   : > { %982 = vst.msk [vmem:[%s2944_s27 + $0x30] sm:$0xff] %vm705_vm7, %v966_v42  ;;  %v1610_v40 = vor.u32 %v1609_v58, %v1568_v54  ;;  %v1570_v50 = vrot.slane %v1568_v54, 7 }
 0x25e   : > { %v3563_v45 = vpop.f32.mrf.mxu3 }
 0x260   : > { %v884_v2 = vpop.f32.mrf.mxu1  ;;  %v3568_v57 = vpop.f32.mrf.mxu2 }
 0x261   : > { %v934_v12 = vadd.f32 %v3460_v32, %v884_v2 }
 0x263   : > { %v967_v43 = vadd.f32 %v3527_v27, %v934_v12  ;;  %2467 = vmatmul.msk.bf16.gmra.mxu3 %vm705_vm7, %v1625_v41  ;;  %v1425_v41 = vld [vmem:[%s2944_s27 + $0x28] sm:$0xff] }
 0x265   : > { %983 = vst.msk [vmem:[%s2944_s27 + $0x38] sm:$0xff] %vm705_vm7, %v967_v43  ;;  %v1627_v43 = vsel %vm2990_vm6, %v1610_v40, 0 }
 0x266   : > { %v3577_v23 = vpop.f32.mrf.mxu3 }
 0x268   : > { %v867_v22 = vpop.f32.mrf.mxu0  ;;  %v887_v32 = vpop.f32.mrf.mxu1 }
 0x269   : > { %v917_v62 = vadd.f32 %v3303_v4, %v867_v22  ;;  %v937_v15 = vadd.f32 %v3471_v5, %v887_v32  ;;  %v3584_v7 = vpop.f32.mrf.mxu2  ;;  %v1626_v5 = vsel %vm2990_vm6, %v1608_v21, 0  ;;  %v1573_v32 = vor.u32 %v1571_v31, %v1570_v50 }
 0x26b   : > { %v960_v19 = vadd.f32 %v3527_v27, %v917_v62  ;;  %v968_v3 = vadd.f32 %v3527_v27, %v937_v15  ;;  %1826 = vmatmul.bf16.gmra.mxu1 %v1663_v18  ;;  %v1426_v62 = vld [vmem:[%s2944_s27 + $0x30] sm:$0xff]  ;;  %v1578_v15 = vshll.u32 %v3464_v30, 16 }
 0x26d   : > { %976 = vst.msk [vmem:[%s2944_s27] sm:$0xff] %vm705_vm7, %v960_v19 }
 0x26e   : > { %984 = vst.msk [vmem:[%s2944_s27 + $0x40] sm:$0xff] %vm705_vm7, %v968_v3  ;;  %v3592_v33 = vpop.f32.mrf.mxu3 }
 0x270   : > { %v869_v4 = vpop.f32.mrf.mxu0  ;;  %v889_v9 = vpop.f32.mrf.mxu1 }
 0x271   : > { %v919_v29 = vadd.f32 %v3326_v39, %v869_v4  ;;  %v939_v56 = vadd.f32 %v3488_v48, %v889_v9  ;;  %v1390_v13 = vpop.f32.mrf.mxu2  ;;  %v1640_v39 = vpop.permute.xlu2 %1639  ;;  %v1594_v48 = vsel %vm3218_vm10, 0, %v1566_v36  ;;  %v1575_v4 = vshrl.u32 %v3464_v30, 16  ;;  %v1427_v36 = vld [vmem:[%s2944_s27 + $0x38] sm:$0xff] }
 0x272   : > { %v1391_v53 = vadd.f32 %v1390_v13, %v3522_v28  ;;  %v1667_v35 = vsel %vm705_vm7, %v1594_v48, %v1640_v39  ;;  %v1611_v9 = vrot.slane %v1578_v15, 1 }
 0x273   : > { %v961_v0 = vadd.f32 %v3527_v27, %v919_v29  ;;  %v969_v63 = vadd.f32 %v3527_v27, %v939_v56  ;;  %2468 = vmatmul.msk.bf16.gmra.mxu3 %vm705_vm7, %v1626_v5 }
 0x274   : > { %v1440_v59 = vadd.f32 %v1424_v8, %v1391_v53 }
 0x275   : > { %977 = vst.msk [vmem:[%s2944_s27 + $0x8] sm:$0xff] %vm705_vm7, %v961_v0  ;;  %v1612_v0 = vor.u32 %v1611_v9, %v1575_v4 }
 0x276   : > { %985 = vst.msk [vmem:[%s2944_s27 + $0x48] sm:$0xff] %vm705_vm7, %v969_v63  ;;  %v3610_v28 = vpop.f32.mrf.mxu3  ;;  %v1577_v63 = vrot.slane %v1575_v4, 7 }
 0x277   : > { %1456 = vst.msk [vmem:[%s2944_s27 + $0x20] sm:$0xff] %vm705_vm7, %v1440_v59 }
 0x278   : > { %v872_v49 = vpop.f32.mrf.mxu0  ;;  %v892_v14 = vpop.f32.mrf.mxu1  ;;  %v1580_v39 = vor.u32 %v1578_v15, %v1577_v63 }
 0x279   : > { %v922_v10 = vadd.f32 %v3349_v52, %v872_v49  ;;  %v942_v44 = vadd.f32 %v3496_v55, %v892_v14  ;;  %v1392_v42 = vpop.f32.mrf.mxu2  ;;  %v1428_v14 = vld [vmem:[%s2944_s27 + $0x40] sm:$0xff]  ;;  %v1644_v54 = vpop.permute.xlu2 %1643 }
 0x27a   : > { %v1393_v61 = vadd.f32 %v1392_v42, %v3538_v1  ;;  %v1596_v51 = vsel %vm3218_vm10, 0, %v1580_v39 }
 0x27b   : > { %v962_v46 = vadd.f32 %v3527_v27, %v922_v10  ;;  %v970_v2 = vadd.f32 %v3527_v27, %v942_v44  ;;  %1831 = vmatmul.bf16.gmra.mxu1 %v1667_v35  ;;  %v1675_v10 = vsel %vm705_vm7, %v1596_v51, %v1644_v54 }
 0x27c   : > { %v1441_v12 = vadd.f32 %v1425_v41, %v1393_v61  ;;  %v1421_v9 = vld [vmem:[%s2944_s27 + $0x8] sm:$0xff] }
 0x27d   : > { %978 = vst.msk [vmem:[%s2944_s27 + $0x10] sm:$0xff] %vm705_vm7, %v962_v46 }
 0x27e   : > { %986 = vst.msk [vmem:[%s2944_s27 + $0x50] sm:$0xff] %vm705_vm7, %v970_v2  ;;  %v3626_v52 = vpop.f32.mrf.mxu3 }
 0x27f   : > { %1457 = vst.msk [vmem:[%s2944_s27 + $0x28] sm:$0xff] %vm705_vm7, %v1441_v12  ;;  %v1429_v12 = vld [vmem:[%s2944_s27 + $0x48] sm:$0xff] }
 0x280   : > { %v874_v55 = vpop.f32.mrf.mxu0  ;;  %v894_v1 = vpop.f32.mrf.mxu1 }
 0x281   : > { %v924_v47 = vadd.f32 %v3380_v25, %v874_v55  ;;  %v944_v24 = vadd.f32 %v3509_v26, %v894_v1  ;;  %v1395_v22 = vpop.f32.mrf.mxu2  ;;  %v1642_v25 = vpop.permute.xlu1 %1641  ;;  %v1595_v26 = vsel %vm3218_vm10, 0, %v1573_v32 }
 0x282   : > { %v1396_v18 = vadd.f32 %v1395_v22, %v3552_v6  ;;  %v1671_v37 = vsel %vm705_vm7, %v1595_v26, %v1642_v25 }
 0x283   : > { %v963_v60 = vadd.f32 %v3527_v27, %v924_v47  ;;  %v971_v16 = vadd.f32 %v3527_v27, %v944_v24  ;;  %2469 = vmatmul.msk.bf16.gmra.mxu3 %vm705_vm7, %v1627_v43 }
 0x284   : > { %v1442_v19 = vadd.f32 %v1426_v62, %v1396_v18  ;;  %v1422_v46 = vld [vmem:[%s2944_s27 + $0x10] sm:$0xff]  ;;  %v1420_v62 = vld [vmem:[%s2944_s27] sm:$0xff] }
 0x285   : > { %979 = vst.msk [vmem:[%s2944_s27 + $0x18] sm:$0xff] %vm705_vm7, %v963_v60  ;;  %v1430_v32 = vld [vmem:[%s2944_s27 + $0x50] sm:$0xff] }
 0x286   : > { %987 = vst.msk [vmem:[%s2944_s27 + $0x58] sm:$0xff] %vm705_vm7, %v971_v16  ;;  %v3646_v6 = vpop.f32.mrf.mxu3 }
 0x287   : > { %1458 = vst.msk [vmem:[%s2944_s27 + $0x30] sm:$0xff] %vm705_vm7, %v1442_v19 }
 0x288   : > { %v897_v3 = vpop.f32.mrf.mxu1  ;;  %v3650_v21 = vpop.f32.mrf.mxu0 }
 0x289   : > { %v947_v5 = vadd.f32 %v3516_v17, %v897_v3  ;;  %v1397_v29 = vpop.f32.mrf.mxu2 }
 0x28a   : > { %v1398_v56 = vadd.f32 %v1397_v29, %v3563_v45  ;;  %v1628_v45 = vsel %vm2990_vm6, %v1612_v0, 0 }
 0x28b   : > { %v972_v13 = vadd.f32 %v3527_v27, %v947_v5  ;;  %1836 = vmatmul.bf16.gmra.mxu1 %v1671_v37 }
 0x28c   : > { %v1443_v53 = vadd.f32 %v1427_v36, %v1398_v56  ;;  %v1423_v43 = vld [vmem:[%s2944_s27 + $0x18] sm:$0xff] }
 0x28d   : > { %988 = vst.msk [vmem:[%s2944_s27 + $0x60] sm:$0xff] %vm705_vm7, %v972_v13  ;;  %v1431_v19 = vld [vmem:[%s2944_s27 + $0x58] sm:$0xff] }
 0x28e   : > { %1459 = vst.msk [vmem:[%s2944_s27 + $0x38] sm:$0xff] %vm705_vm7, %v1443_v53  ;;  %v3662_v30 = vpop.f32.mrf.mxu3 }
 0x290   : > { %v899_v17 = vpop.f32.mrf.mxu1  ;;  %v1333_v8 = vpop.f32.mrf.mxu0 }
 0x291   : > { %v949_v31 = vadd.f32 %v3533_v38, %v899_v17  ;;  %v1400_v59 = vpop.f32.mrf.mxu2 }
 0x292   : > { %v1401_v48 = vadd.f32 %v1400_v59, %v3577_v23 }
 0x293   : > { %v973_v49 = vadd.f32 %v3527_v27, %v949_v31  ;;  %2470 = vmatmul.msk.bf16.gmra.mxu3 %vm705_vm7, %v1628_v45 }
 0x294   : > { %v1444_v35 = vadd.f32 %v1428_v14, %v1401_v48  ;;  %v1432_v56 = vld [vmem:[%s2944_s27 + $0x60] sm:$0xff] }
 0x295   : > { %989 = vst.msk [vmem:[%s2944_s27 + $0x68] sm:$0xff] %vm705_vm7, %v973_v49 }
 0x296   : > { %1460 = vst.msk [vmem:[%s2944_s27 + $0x40] sm:$0xff] %vm705_vm7, %v1444_v35  ;;  %v3677_v38 = vpop.f32.mrf.mxu3 }
 0x298   : > { %v902_v23 = vpop.f32.mrf.mxu1  ;;  %v1336_v58 = vpop.f32.mrf.mxu0 }
 0x299   : > { %v952_v44 = vadd.f32 %v3543_v20, %v902_v23  ;;  %v1386_v42 = vadd.f32 %v3568_v57, %v1336_v58  ;;  %v1402_v61 = vpop.f32.mrf.mxu2 }
 0x29a   : > { %v1403_v34 = vadd.f32 %v1402_v61, %v3592_v33 }
 0x29b   : > { %v974_v2 = vadd.f32 %v3527_v27, %v952_v44  ;;  %v1438_v41 = vadd.f32 %v1422_v46, %v1386_v42  ;;  %1841 = vmatmul.bf16.gmra.mxu1 %v1675_v10 }
 0x29c   : > { %v1445_v40 = vadd.f32 %v1429_v12, %v1403_v34  ;;  %v1433_v39 = vld [vmem:[%s2944_s27 + $0x68] sm:$0xff] }
 0x29d   : > { %990 = vst.msk [vmem:[%s2944_s27 + $0x70] sm:$0xff] %vm705_vm7, %v974_v2 }
 0x29e   : > { %1454 = vst.msk [vmem:[%s2944_s27 + $0x10] sm:$0xff] %vm705_vm7, %v1438_v41  ;;  %v3690_v20 = vpop.f32.mrf.mxu3 }
 0x29f   : > { %1461 = vst.msk [vmem:[%s2944_s27 + $0x48] sm:$0xff] %vm705_vm7, %v1445_v40 }
 0x2a0   : > { %v904_v57 = vpop.f32.mrf.mxu1  ;;  %v1338_v33 = vpop.f32.mrf.mxu0 }
 0x2a1   : > { %v954_v50 = vadd.f32 %v3558_v11, %v904_v57  ;;  %v1388_v55 = vadd.f32 %v3584_v7, %v1338_v33  ;;  %v1405_v1 = vpop.f32.mrf.mxu2 }
 0x2a2   : > { %v1406_v47 = vadd.f32 %v1405_v1, %v3610_v28 }
 0x2a3   : > { %v975_v24 = vadd.f32 %v3527_v27, %v954_v50  ;;  %v1439_v22 = vadd.f32 %v1423_v43, %v1388_v55  ;;  %v1900_v50 = vld [vmem:[%s2944_s27 + $0x20] sm:$0xff] }
 0x2a4   : > { %v1446_v18 = vadd.f32 %v1430_v32, %v1406_v47  ;;  %v1434_v61 = vld [vmem:[%s2944_s27 + $0x70] sm:$0xff] }
 0x2a5   : > { %991 = vst.msk [vmem:[%s2944_s27 + $0x78] sm:$0xff] %vm705_vm7, %v975_v24 }
 0x2a6   : > { %1455 = vst.msk [vmem:[%s2944_s27 + $0x18] sm:$0xff] %vm705_vm7, %v1439_v22  ;;  %v1856_v11 = vpop.f32.mrf.mxu3 }
 0x2a7   : > { %1462 = vst.msk [vmem:[%s2944_s27 + $0x50] sm:$0xff] %vm705_vm7, %v1446_v18 }
 0x2a8   : > { %v1380_v7 = vpop.f32.mrf.mxu0  ;;  %v1807_v60 = vpop.f32.mrf.mxu1 }
 0x2a9   : > { %v1381_v28 = vadd.f32 %v1380_v7, %v3650_v21  ;;  %v1407_v16 = vpop.f32.mrf.mxu2  ;;  %v1857_v5 = vadd.f32 %v1856_v11, %v1807_v60 }
 0x2aa   : > { %v1408_v27 = vadd.f32 %v1407_v16, %v3626_v52 }
 0x2ab   : > { %v1436_v15 = vadd.f32 %v1420_v62, %v1381_v28 }
 0x2ac   : > { %v1447_v25 = vadd.f32 %v1431_v19, %v1408_v27  ;;  %v1435_v43 = vld [vmem:[%s2944_s27 + $0x78] sm:$0xff] }
 0x2ad   : > { %1452 = vst.msk [vmem:[%s2944_s27] sm:$0xff] %vm705_vm7, %v1436_v15  ;;  %v1899_v10 = vld [vmem:[%s2944_s27 + $0x18] sm:$0xff]  ;;  %v1902_v15 = vld [vmem:[%s2944_s27 + $0x30] sm:$0xff] }
 0x2ae   : > { %1463 = vst.msk [vmem:[%s2944_s27 + $0x58] sm:$0xff] %vm705_vm7, %v1447_v25  ;;  %v1858_v26 = vpop.f32.mrf.mxu3 }
 0x2b0   : > { %v1382_v3 = vpop.f32.mrf.mxu0  ;;  %v1809_v37 = vpop.f32.mrf.mxu1 }
 0x2b1   : > { %v1383_v21 = vadd.f32 %v1382_v3, %v1333_v8  ;;  %v1410_v4 = vpop.f32.mrf.mxu2  ;;  %v1898_v8 = vld [vmem:[%s2944_s27 + $0x10] sm:$0xff]  ;;  %v1859_v31 = vadd.f32 %v1858_v26, %v1809_v37 }
 0x2b2   : > { %v1411_v52 = vadd.f32 %v1410_v4, %v3646_v6  ;;  %v1903_v4 = vld [vmem:[%s2944_s27 + $0x38] sm:$0xff] }
 0x2b3   : > { %v1437_v29 = vadd.f32 %v1421_v9, %v1383_v21 }
 0x2b4   : > { %v1896_v13 = vld [vmem:[%s2944_s27] sm:$0xff]  ;;  %v1448_v36 = vadd.f32 %v1432_v56, %v1411_v52 }
 0x2b5   : > { %v1912_v53 = vadd.f32 %v1896_v13, %v1857_v5  ;;  %1453 = vst.msk [vmem:[%s2944_s27 + $0x8] sm:$0xff] %vm705_vm7, %v1437_v29 }
 0x2b6   : > { %1464 = vst.msk [vmem:[%s2944_s27 + $0x60] sm:$0xff] %vm705_vm7, %v1448_v36  ;;  %v1861_v0 = vpop.f32.mrf.mxu3  ;;  %v1904_v36 = vld [vmem:[%s2944_s27 + $0x40] sm:$0xff] }
 0x2b7   : > { %1928 = vst.msk [vmem:[%s2944_s27] sm:$0xff] %vm705_vm7, %v1912_v53 }
 0x2b8   : > { %v1812_v63 = vpop.f32.mrf.mxu1 }
 0x2b9   : > { %v1862_v6 = vadd.f32 %v1861_v0, %v1812_v63  ;;  %v1412_v17 = vpop.f32.mrf.mxu2 }
 0x2ba   : > { %v1413_v45 = vadd.f32 %v1412_v17, %v3662_v30 }
 0x2bb   : > { %v1914_v59 = vadd.f32 %v1898_v8, %v1862_v6 }
 0x2bc   : > { %v1897_v48 = vld [vmem:[%s2944_s27 + $0x8] sm:$0xff]  ;;  %v1449_v49 = vadd.f32 %v1433_v39, %v1413_v45 }
 0x2bd   : > { %v1913_v14 = vadd.f32 %v1897_v48, %v1859_v31  ;;  %1930 = vst.msk [vmem:[%s2944_s27 + $0x10] sm:$0xff] %vm705_vm7, %v1914_v59  ;;  %v1905_v45 = vld [vmem:[%s2944_s27 + $0x48] sm:$0xff] }
 0x2be   : > { %v1944_v35 = vld [vmem:[%s2944_s27] sm:$0xff]  ;;  %1465 = vst.msk [vmem:[%s2944_s27 + $0x68] sm:$0xff] %vm705_vm7, %v1449_v49  ;;  %v1863_v54 = vpop.f32.mrf.mxu3 }
 0x2bf   : > { %v1960_v51 = vmax.f32 %v1944_v35, 0.0  ;;  %1929 = vst.msk [vmem:[%s2944_s27 + $0x8] sm:$0xff] %vm705_vm7, %v1913_v14  ;;  %v1906_v35 = vld [vmem:[%s2944_s27 + $0x50] sm:$0xff] }
 0x2c0   : > { %v1814_v30 = vpop.f32.mrf.mxu1 }
 0x2c1   : > { %1976 = vst.msk [vmem:[%s2944_s27] sm:$0xff] %vm705_vm7, %v1960_v51  ;;  %v1864_v23 = vadd.f32 %v1863_v54, %v1814_v30  ;;  %v1415_v58 = vpop.f32.mrf.mxu2 }
 0x2c2   : > { %v1416_v44 = vadd.f32 %v1415_v58, %v3677_v38 }
 0x2c3   : > { %v1915_v42 = vadd.f32 %v1899_v10, %v1864_v23 }
 0x2c4   : > { %v1946_v46 = vld [vmem:[%s2944_s27 + $0x10] sm:$0xff]  ;;  %v1450_v34 = vadd.f32 %v1434_v61, %v1416_v44  ;;  %v1907_v44 = vld [vmem:[%s2944_s27 + $0x58] sm:$0xff] }
 0x2c5   : > { %v1962_v2 = vmax.f32 %v1946_v46, 0.0  ;;  %1931 = vst.msk [vmem:[%s2944_s27 + $0x18] sm:$0xff] %vm705_vm7, %v1915_v42 }
 0x2c6   : > { %v1945_v41 = vld [vmem:[%s2944_s27 + $0x8] sm:$0xff]  ;;  %1466 = vst.msk [vmem:[%s2944_s27 + $0x70] sm:$0xff] %vm705_vm7, %v1450_v34  ;;  %v1866_v12 = vpop.f32.mrf.mxu3 }
 0x2c7   : > { %v1961_v40 = vmax.f32 %v1945_v41, 0.0  ;;  %1978 = vst.msk [vmem:[%s2944_s27 + $0x10] sm:$0xff] %vm705_vm7, %v1962_v2 }
 0x2c8   : > { %v1817_v38 = vpop.f32.mrf.mxu1 }
 0x2c9   : > { %1977 = vst.msk [vmem:[%s2944_s27 + $0x8] sm:$0xff] %vm705_vm7, %v1961_v40  ;;  %v1867_v57 = vadd.f32 %v1866_v12, %v1817_v38  ;;  %v1417_v33 = vpop.f32.mrf.mxu2  ;;  %v1908_v12 = vld [vmem:[%s2944_s27 + $0x60] sm:$0xff] }
 0x2ca   : > { %v1418_v55 = vadd.f32 %v1417_v33, %v3690_v20  ;;  %v1901_v20 = vld [vmem:[%s2944_s27 + $0x28] sm:$0xff] }
 0x2cb   : > { %v1916_v1 = vadd.f32 %v1900_v50, %v1867_v57 }
 0x2cc   : > { %v1947_v47 = vld [vmem:[%s2944_s27 + $0x18] sm:$0xff]  ;;  %v1451_v24 = vadd.f32 %v1435_v43, %v1418_v55 }
 0x2cd   : > { %v1963_v22 = vmax.f32 %v1947_v47, 0.0  ;;  %1932 = vst.msk [vmem:[%s2944_s27 + $0x20] sm:$0xff] %vm705_vm7, %v1916_v1  ;;  %v1909_v1 = vld [vmem:[%s2944_s27 + $0x68] sm:$0xff] }
 0x2ce   : > { %1467 = vst.msk [vmem:[%s2944_s27 + $0x78] sm:$0xff] %vm705_vm7, %v1451_v24  ;;  %v1868_v32 = vpop.f32.mrf.mxu3 }
 0x2cf   : > { %1979 = vst.msk [vmem:[%s2944_s27 + $0x18] sm:$0xff] %vm705_vm7, %v1963_v22 }
 0x2d0   : > { %v1819_v18 = vpop.f32.mrf.mxu1 }
 0x2d1   : > { %v1869_v11 = vadd.f32 %v1868_v32, %v1819_v18 }
 0x2d3   : > { %v1917_v7 = vadd.f32 %v1901_v20, %v1869_v11  ;;  %v1910_v11 = vld [vmem:[%s2944_s27 + $0x70] sm:$0xff] }
 0x2d4   : > { %v1948_v60 = vld [vmem:[%s2944_s27 + $0x20] sm:$0xff] }
 0x2d5   : > { %v1964_v28 = vmax.f32 %v1948_v60, 0.0  ;;  %1933 = vst.msk [vmem:[%s2944_s27 + $0x28] sm:$0xff] %vm705_vm7, %v1917_v7 }
 0x2d6   : > { %v1871_v16 = vpop.f32.mrf.mxu3 }
 0x2d7   : > { %1980 = vst.msk [vmem:[%s2944_s27 + $0x20] sm:$0xff] %vm705_vm7, %v1964_v28 }
 0x2d8   : > { %v1822_v62 = vpop.f32.mrf.mxu1 }
 0x2d9   : > { %v1872_v27 = vadd.f32 %v1871_v16, %v1822_v62 }
 0x2db   : > { %v1918_v19 = vadd.f32 %v1902_v15, %v1872_v27  ;;  %v1911_v27 = vld [vmem:[%s2944_s27 + $0x78] sm:$0xff] }
 0x2dc   : > { %v1949_v25 = vld [vmem:[%s2944_s27 + $0x28] sm:$0xff] }
 0x2dd   : > { %v1965_v26 = vmax.f32 %v1949_v25, 0.0  ;;  %1934 = vst.msk [vmem:[%s2944_s27 + $0x30] sm:$0xff] %vm705_vm7, %v1918_v19 }
 0x2de   : > { %v1873_v3 = vpop.f32.mrf.mxu3 }
 0x2df   : > { %1981 = vst.msk [vmem:[%s2944_s27 + $0x28] sm:$0xff] %vm705_vm7, %v1965_v26 }
 0x2e0   : > { %v1824_v37 = vpop.f32.mrf.mxu1 }
 0x2e1   : > { %v1874_v21 = vadd.f32 %v1873_v3, %v1824_v37 }
 0x2e3   : > { %v1919_v9 = vadd.f32 %v1903_v4, %v1874_v21 }
 0x2e4   : > { %v1950_v52 = vld [vmem:[%s2944_s27 + $0x30] sm:$0xff] }
 0x2e5   : > { %v1966_v5 = vmax.f32 %v1950_v52, 0.0  ;;  %1935 = vst.msk [vmem:[%s2944_s27 + $0x38] sm:$0xff] %vm705_vm7, %v1919_v9 }
 0x2e6   : > { %v1876_v29 = vpop.f32.mrf.mxu3 }
 0x2e7   : > { %1982 = vst.msk [vmem:[%s2944_s27 + $0x30] sm:$0xff] %vm705_vm7, %v1966_v5 }
 0x2e8   : > { %v1827_v56 = vpop.f32.mrf.mxu1 }
 0x2e9   : > { %v1877_v13 = vadd.f32 %v1876_v29, %v1827_v56 }
 0x2eb   : > { %v1920_v53 = vadd.f32 %v1904_v36, %v1877_v13 }
 0x2ec   : > { %v1951_v0 = vld [vmem:[%s2944_s27 + $0x38] sm:$0xff] }
 0x2ed   : > { %v1967_v63 = vmax.f32 %v1951_v0, 0.0  ;;  %1936 = vst.msk [vmem:[%s2944_s27 + $0x40] sm:$0xff] %vm705_vm7, %v1920_v53 }
 0x2ee   : > { %v1878_v6 = vpop.f32.mrf.mxu3 }
 0x2ef   : > { %1983 = vst.msk [vmem:[%s2944_s27 + $0x38] sm:$0xff] %vm705_vm7, %v1967_v63 }
 0x2f0   : > { %v1829_v17 = vpop.f32.mrf.mxu1 }
 0x2f1   : > { %v1879_v8 = vadd.f32 %v1878_v6, %v1829_v17 }
 0x2f3   : > { %v1921_v31 = vadd.f32 %v1905_v45, %v1879_v8 }
 0x2f4   : > { %v1952_v59 = vld [vmem:[%s2944_s27 + $0x40] sm:$0xff] }
 0x2f5   : > { %v1968_v39 = vmax.f32 %v1952_v59, 0.0  ;;  %1937 = vst.msk [vmem:[%s2944_s27 + $0x48] sm:$0xff] %vm705_vm7, %v1921_v31 }
 0x2f6   : > { %v1881_v48 = vpop.f32.mrf.mxu3 }
 0x2f7   : > { %1984 = vst.msk [vmem:[%s2944_s27 + $0x40] sm:$0xff] %vm705_vm7, %v1968_v39 }
 0x2f8   : > { %v1832_v49 = vpop.f32.mrf.mxu1 }
 0x2f9   : > { %v1882_v14 = vadd.f32 %v1881_v48, %v1832_v49 }
 0x2fb   : > { %v1922_v54 = vadd.f32 %v1906_v35, %v1882_v14 }
 0x2fc   : > { %v1953_v51 = vld [vmem:[%s2944_s27 + $0x48] sm:$0xff] }
 0x2fd   : > { %v1969_v30 = vmax.f32 %v1953_v51, 0.0  ;;  %1938 = vst.msk [vmem:[%s2944_s27 + $0x50] sm:$0xff] %vm705_vm7, %v1922_v54 }
 0x2fe   : > { %v1883_v23 = vpop.f32.mrf.mxu3 }
 0x2ff   : > { %1985 = vst.msk [vmem:[%s2944_s27 + $0x48] sm:$0xff] %vm705_vm7, %v1969_v30 }
 0x300   : > { %v1834_v58 = vpop.f32.mrf.mxu1 }
 0x301   : > { %v1884_v10 = vadd.f32 %v1883_v23, %v1834_v58 }
 0x303   : > { %v1923_v42 = vadd.f32 %v1907_v44, %v1884_v10 }
 0x304   : > { %v1954_v61 = vld [vmem:[%s2944_s27 + $0x50] sm:$0xff] }
 0x305   : > { %v1970_v46 = vmax.f32 %v1954_v61, 0.0  ;;  %1939 = vst.msk [vmem:[%s2944_s27 + $0x58] sm:$0xff] %vm705_vm7, %v1923_v42 }
 0x306   : > { %v1886_v34 = vpop.f32.mrf.mxu3 }
 0x307   : > { %1986 = vst.msk [vmem:[%s2944_s27 + $0x50] sm:$0xff] %vm705_vm7, %v1970_v46 }
 0x308   : > { %v1837_v2 = vpop.f32.mrf.mxu1 }
 0x309   : > { %v1887_v41 = vadd.f32 %v1886_v34, %v1837_v2 }
 0x30b   : > { %v1924_v40 = vadd.f32 %v1908_v12, %v1887_v41 }
 0x30c   : > { %v1955_v38 = vld [vmem:[%s2944_s27 + $0x58] sm:$0xff] }
 0x30d   : > { %v1971_v57 = vmax.f32 %v1955_v38, 0.0  ;;  %1940 = vst.msk [vmem:[%s2944_s27 + $0x60] sm:$0xff] %vm705_vm7, %v1924_v40 }
 0x30e   : > { %v1888_v33 = vpop.f32.mrf.mxu3 }
 0x30f   : > { %1987 = vst.msk [vmem:[%s2944_s27 + $0x58] sm:$0xff] %vm705_vm7, %v1971_v57 }
 0x310   : > { %v1839_v50 = vpop.f32.mrf.mxu1 }
 0x311   : > { %v1889_v55 = vadd.f32 %v1888_v33, %v1839_v50 }
 0x313   : > { %v1925_v43 = vadd.f32 %v1909_v1, %v1889_v55 }
 0x314   : > { %v1956_v47 = vld [vmem:[%s2944_s27 + $0x60] sm:$0xff] }
 0x315   : > { %v1972_v24 = vmax.f32 %v1956_v47, 0.0  ;;  %1941 = vst.msk [vmem:[%s2944_s27 + $0x68] sm:$0xff] %vm705_vm7, %v1925_v43 }
 0x316   : > { %v1891_v22 = vpop.f32.mrf.mxu3 }
 0x317   : > { %1988 = vst.msk [vmem:[%s2944_s27 + $0x60] sm:$0xff] %vm705_vm7, %v1972_v24 }
 0x318   : > { %v1842_v32 = vpop.f32.mrf.mxu1 }
 0x319   : > { %v1892_v18 = vadd.f32 %v1891_v22, %v1842_v32 }
 0x31b   : > { %v1926_v20 = vadd.f32 %v1910_v11, %v1892_v18 }
 0x31c   : > { %v1957_v7 = vld [vmem:[%s2944_s27 + $0x68] sm:$0xff] }
 0x31d   : > { %v1973_v60 = vmax.f32 %v1957_v7, 0.0  ;;  %1942 = vst.msk [vmem:[%s2944_s27 + $0x70] sm:$0xff] %vm705_vm7, %v1926_v20 }
 0x31e   : > { %v1893_v28 = vpop.f32.mrf.mxu3 }
 0x31f   : > { %1989 = vst.msk [vmem:[%s2944_s27 + $0x68] sm:$0xff] %vm705_vm7, %v1973_v60 }
 0x320   : > { %v1844_v16 = vpop.f32.mrf.mxu1 }
 0x321   : > { %v1894_v62 = vadd.f32 %v1893_v28, %v1844_v16 }
 0x323   : > { %v1927_v15 = vadd.f32 %v1911_v27, %v1894_v62 }
 0x324   : > { %v1958_v19 = vld [vmem:[%s2944_s27 + $0x70] sm:$0xff] }
 0x325   : > { %v1974_v25 = vmax.f32 %v1958_v19, 0.0  ;;  %1943 = vst.msk [vmem:[%s2944_s27 + $0x78] sm:$0xff] %vm705_vm7, %v1927_v15 }
 0x327   : > { %1990 = vst.msk [vmem:[%s2944_s27 + $0x70] sm:$0xff] %vm705_vm7, %v1974_v25 }
 0x32c   : > { %v1959_v26 = vld [vmem:[%s2944_s27 + $0x78] sm:$0xff] }
 0x32d   : > { %v1975_v3 = vmax.f32 %v1959_v26, 0.0 }
 0x32f   : > { %1991 = vst.msk [vmem:[%s2944_s27 + $0x78] sm:$0xff] %vm705_vm7, %v1975_v3 }
 0x330   : > { %2680 = shalt.err (!%p2677_p9)
}
 0x331   : > { %s2753_s12 = smov 128   ;;  %s2754_s27 = smov 8  }
 0x332   : > { %2574 = dma.vmem_to_hbm [thread:$0]  (%p2836_p3), %s2009_s15, 2048, %s2011_s16, %s1993_s26, %s2753_s12, %s2753_s12, %s2754_s27  }
 0x333 PF: > { %p2580_p10 = scmp.ge.s32.totalorder %s2747_s25, 2  ;;  %s2025_s21 = sand.u32 1, %s2719_s18  }
 0x334   : > { %s2026_s22 = scalar_lea.sflag [#allocation4], %s2025_s21 }
 0x335   : > { %p2577_p11 = pnand %p2580_p10, %p2845_p8 }
 0x337   : > { %p2578_p12 = pneg %p2577_p11 }
 0x339   : > { %2714 = dma.done.wait (%p2578_p12), %s2026_s22, 2048  }
 0x33a   : > { %2716 = vsyncadd (%p2578_p12), %s2026_s22, 4294965248  ;;  %s18_s25 = sadd.s32 1, %s2747_s25   ;;  %s3887_s18 = smov %s2723_s19 }
 0x33b   : > { %p15_p13 = scmp.ge.s32.totalorder %s18_s25, 6   ;;  %s3888_s19 = smov %s2727_s20 }
 0x33c   : > { %s3889_s20 = smov %s2854_s11  ;;  %s3890_s21 = smov %s2739_s23 }
 0x33d   : > { %s3891_s22 = smov %s2743_s24  ;;  %s3892_s23 = smov %s3895_s28 }
 0x33e   : > { %s3893_s24 = smov %s3899_s29  ;;  %17 = sbr.rel (!%p15_p13) target bundleno = 5 (0x5), region = 89 }
 0x343   :  { %2032 = vsyncpa [#allocation4], 1 }
 0x344   :  { %2034 = vsyncpa [#allocation4 + $0x1], 1 }

</bundles_post_ra>
